<compile_context>
chip_gen: v7x
topology: tpu7x:2x2x1
jax: 0.10.0
libtpu: 0.0.40
codegen_flags: <defaults>
</compile_context>

<pallas_src>
import math

import jax
import jax.numpy as jnp
import numpy as np
from jax import lax
from jax.experimental import pallas as pl
from jax.experimental.pallas import tpu as pltpu


# ------------------------------ tiling helper ---------------------------------

def _pick_tile(dim, desired, align=8):
    """Largest tile <= desired that divides dim and is a multiple of `align`.

    Falls back to the full extent only when no aligned divisor exists (always
    legal for BlockSpec since it equals the array dim)."""
    if dim <= desired:
        return dim
    for t in range(desired, align - 1, -1):
        if dim % t == 0 and t % align == 0:
            return t
    # TODO(synk): pad-to-multiple would be nicer for pathological (prime-ish) dims.
    return dim


# ----------------------------- tiled linear kernel ----------------------------

def _linear_kernel(x_ref, w_ref, b_ref, o_ref, acc_ref):
    # x: (tm, tk) bf16, w: (tk, tn) bf16 (pre-transposed), b: (1, tn) f32,
    # acc: (tm, tn) f32.  K is swept along grid axis 2 (innermost).
    @pl.when(pl.program_id(2) == 0)
    def _():
        acc_ref[...] = jnp.zeros_like(acc_ref)

    acc_ref[...] += jnp.dot(x_ref[...], w_ref[...],
                            preferred_element_type=jnp.float32)

    @pl.when(pl.program_id(2) == pl.num_programs(2) - 1)
    def _():
        o_ref[...] = (acc_ref[...] + b_ref[...]).astype(o_ref.dtype)


def linear(x2d, wt, b, *, out_dtype=None, tm=512, tn=512, tk=512):
    """x2d: (M, K) @ wt: (K, N) (already transposed) + b: (N,) -> (M, N).

    bf16 operands / f32 accumulation.  Tile defaults target v5e/v6e (128 MiB
    VMEM); on v7x (64 MiB physical) sweep down to ~256-384 and keep the vmem
    limit at or below ~48 MiB."""
    M, K = x2d.shape
    K2, N = wt.shape
    assert K == K2
    if out_dtype is None:
        out_dtype = x2d.dtype
    tm = _pick_tile(M, tm, align=8)
    tn = _pick_tile(N, tn, align=128)
    tk = _pick_tile(K, tk, align=128)
    b2 = b.reshape(1, N).astype(jnp.float32)
    grid = (M // tm, N // tn, K // tk)
    return pl.pallas_call(
        _linear_kernel,
        out_shape=jax.ShapeDtypeStruct((M, N), out_dtype),
        grid_spec=pltpu.PrefetchScalarGridSpec(
            num_scalar_prefetch=0,
            grid=grid,
            in_specs=[
                pl.BlockSpec((tm, tk), lambda i, j, k: (i, k)),
                pl.BlockSpec((tk, tn), lambda i, j, k: (k, j)),
                pl.BlockSpec((1, tn), lambda i, j, k: (0, j)),
            ],
            out_specs=pl.BlockSpec((tm, tn), lambda i, j, k: (i, j)),
            scratch_shapes=[pltpu.VMEM((tm, tn), jnp.float32)],
        ),
        compiler_params=pltpu.CompilerParams(
            dimension_semantics=("parallel", "parallel", "arbitrary"),
            vmem_limit_bytes=48 * 1024 * 1024,   # re-sweep on v7x (64 MiB physical)
        ),
    )(x2d, wt, b2)


# ------------------------- flash-style MQA attention --------------------------

def _mqa_flash_kernel(q_ref, k_ref, v_ref, cq_ref, sq_ref, ck_ref, sk_ref,
                      o_ref, qr_ref, m_ref, l_ref, acc_ref):
    # q_ref  : (1, TQ*H, hd) bf16, row r = t*H + h (all heads of one q tile)
    # k_ref  : (1, TK, hd)   bf16, shared across heads
    # v_ref  : (1, TK, hd)   bf16
    # cq/sq  : (TQ*H, hd)    bf16 rotary tables (time-repeated per head);
    #                        sq carries the rotate_half sign (-/+ halves)
    # ck/sk  : (TK, hd)      bf16 rotary tables for the shared k
    # o_ref  : (1, TQ*H, hd) output
    # scratch: qr (TQ*H, hd) bf16 ; m, l (TQ*H, 1) f32 ; acc (TQ*H, hd) f32
    hd = k_ref.shape[-1]
    half = hd // 2
    scale = 1.0 / math.sqrt(hd)
    ki = pl.program_id(2)

    @pl.when(ki == 0)
    def _init():
        # rotary (XLU roll, sign folded into sq) + 1/sqrt(hd) fold, applied to q
        # ONCE per (b, q-tile) in f32 and cached in bf16 for the whole kv sweep.
        q = q_ref[0].astype(jnp.float32)
        cq = cq_ref[...].astype(jnp.float32)
        sq = sq_ref[...].astype(jnp.float32)
        qr = (q * cq + pltpu.roll(q, shift=half, axis=1) * sq) * scale
        qr_ref[...] = qr.astype(qr_ref.dtype)
        m_ref[...] = jnp.full_like(m_ref, -jnp.inf)
        l_ref[...] = jnp.zeros_like(l_ref)
        acc_ref[...] = jnp.zeros_like(acc_ref)

    # rotary on the shared k tile (rotated once per kv tile per sweep; negligible
    # VPU/XLU work next to the two MXU matmuls below).
    k = k_ref[0].astype(jnp.float32)
    kr = (k * ck_ref[...].astype(jnp.float32)
          + pltpu.roll(k, shift=half, axis=1) * sk_ref[...].astype(jnp.float32))
    kr = kr.astype(k_ref.dtype)

    # scores for ALL heads at once: (TQ*H, hd) x (TK, hd)^T -> (TQ*H, TK), f32.
    s = lax.dot_general(qr_ref[...], kr, (((1,), (1,)), ((), ())),
                        preferred_element_type=jnp.float32)

    # online softmax (no causal mask in the source module).
    m_prev = m_ref[...]
    m_new = jnp.maximum(m_prev, jnp.max(s, axis=-1, keepdims=True))
    alpha = jnp.exp(m_prev - m_new)
    p = jnp.exp(s - m_new)
    l_ref[...] = alpha * l_ref[...] + jnp.sum(p, axis=-1, keepdims=True)
    acc_ref[...] = alpha * acc_ref[...] + jnp.dot(
        p.astype(v_ref.dtype), v_ref[0], preferred_element_type=jnp.float32)
    m_ref[...] = m_new

    # TODO(synk): F.dropout(att, p=config.dropout) omitted (identity for p=0 / eval).
    # TODO(synk): `last_attn_weights` buffer is not exported from the kernel.

    @pl.when(ki == pl.num_programs(2) - 1)
    def _finalize():
        inv_l = pl.reciprocal(l_ref[...], approx=True)   # EUP, ~free slot
        o_ref[0] = (acc_ref[...] * inv_l).astype(o_ref.dtype)


def mqa_attention(q2, k, v, cos_q, sin_q, cos_k, sin_k, *, n_head, tq=128, tk=128):
    """q2: (B, T*H, hd); k, v: (B, T, hd) -> (B, T*H, hd).

    Grid (B, T/tq, T/tk): B and the query axis are "parallel" (megacore
    shardable on v7x), the kv axis is the innermost "arbitrary" reduction with
    VMEM-resident m/l/acc -- VMEM use is bounded per tile at any T."""
    B, TH, hd = q2.shape
    T = k.shape[1]
    assert TH == T * n_head
    tq = _pick_tile(T, tq, align=8)
    tk = _pick_tile(T, tk, align=8)
    rows = tq * n_head
    grid = (B, T // tq, T // tk)
    return pl.pallas_call(
        _mqa_flash_kernel,
        out_shape=jax.ShapeDtypeStruct((B, TH, hd), q2.dtype),
        grid_spec=pltpu.PrefetchScalarGridSpec(
            num_scalar_prefetch=0,
            grid=grid,
            in_specs=[
                pl.BlockSpec((1, rows, hd), lambda b, qi, ki: (b, qi, 0)),   # q
                pl.BlockSpec((1, tk, hd), lambda b, qi, ki: (b, ki, 0)),     # k
                pl.BlockSpec((1, tk, hd), lambda b, qi, ki: (b, ki, 0)),     # v
                pl.BlockSpec((rows, hd), lambda b, qi, ki: (qi, 0)),         # cos_q
                pl.BlockSpec((rows, hd), lambda b, qi, ki: (qi, 0)),         # sin_q
                pl.BlockSpec((tk, hd), lambda b, qi, ki: (ki, 0)),           # cos_k
                pl.BlockSpec((tk, hd), lambda b, qi, ki: (ki, 0)),           # sin_k
            ],
            out_specs=pl.BlockSpec((1, rows, hd), lambda b, qi, ki: (b, qi, 0)),
            scratch_shapes=[
                pltpu.VMEM((rows, hd), q2.dtype),     # rotated+scaled q (cached)
                pltpu.VMEM((rows, 1), jnp.float32),   # running max m
                pltpu.VMEM((rows, 1), jnp.float32),   # running denom l
                pltpu.VMEM((rows, hd), jnp.float32),  # output accumulator
            ],
        ),
        compiler_params=pltpu.CompilerParams(
            dimension_semantics=("parallel", "parallel", "arbitrary"),
            vmem_limit_bytes=48 * 1024 * 1024,   # re-derive tiles/limit for v7x
        ),
    )(q2, k, v, cos_q, sin_q, cos_k, sin_k)


# ------------------------------ parameter prep --------------------------------

def rotary_tables(T, hd):
    inv_freq = 1.0 / (10000.0 ** (jnp.arange(0, hd, 2, dtype=jnp.float32) / hd))
    t = jnp.arange(T, dtype=jnp.float32)
    freqs = jnp.outer(t, inv_freq)                    # (T, hd/2)
    emb = jnp.concatenate([freqs, freqs], axis=-1)    # (T, hd)
    return jnp.cos(emb), jnp.sin(emb)


def prepare_params(raw, T, n_head, C, dtype=jnp.bfloat16):
    """One-time prep: transpose weights to (K, N), cast MXU operands / rotary
    tables to bf16 (v6e/v7x; pass jnp.float32 on v5e), fold the rotate_half sign
    into the sin tables, and pre-repeat the q tables for the (T*H, hd) layout."""
    hd = C // n_head
    half = hd // 2
    cos, sin = rotary_tables(T, hd)                   # (T, hd) f32
    # rotate_half(x) == pltpu.roll(x, hd/2) * [-1]*half ++ [+1]*half  -> fold sign
    sign = jnp.concatenate([-jnp.ones((half,), jnp.float32),
                            jnp.ones((hd - half,), jnp.float32)])
    sin_signed = sin * sign
    return {
        "w_attn_t": jnp.asarray(raw["w_attn"]).T.astype(dtype),   # (C, C+2*hd)
        "b_attn": jnp.asarray(raw["b_attn"]).astype(jnp.float32),
        "w_proj_t": jnp.asarray(raw["w_proj"]).T.astype(dtype),   # (C, C)
        "b_proj": jnp.asarray(raw["b_proj"]).astype(jnp.float32),
        "cos_k": cos.astype(dtype),                   # (T, hd)
        "sin_k": sin_signed.astype(dtype),
        # time-repeated tables for the (T*H, hd) q layout (row r = t*H + h)
        "cos_q": jnp.repeat(cos, n_head, axis=0).astype(dtype),   # (T*H, hd)
        "sin_q": jnp.repeat(sin_signed, n_head, axis=0).astype(dtype),
    }


# -------------------------------- full forward --------------------------------

def multi_query_attention_forward(x, prep, *, n_head, tq=128, tk=128):
    B, T, C = x.shape
    assert C % n_head == 0
    hd = C // n_head
    cdtype = prep["w_attn_t"].dtype                   # bf16 compute dtype

    # c_attn : (B*T, C) @ (C, C + 2*hd) + b
    qkv = linear(x.astype(cdtype).reshape(B * T, C), prep["w_attn_t"],
                 prep["b_attn"], out_dtype=cdtype)
    qkv = qkv.reshape(B, T, C + 2 * hd)

    # contiguous reshapes only -- no HBM transposes
    q = qkv[..., :C].reshape(B, T * n_head, hd)       # (B, T*H, hd) row r = t*H+h
    k = qkv[..., C:C + hd]                            # (B, T, hd)
    v = qkv[..., C + hd:]                             # (B, T, hd)

    y = mqa_attention(q, k, v, prep["cos_q"], prep["sin_q"],
                      prep["cos_k"], prep["sin_k"],
                      n_head=n_head, tq=tq, tk=tk)    # (B, T*H, hd)
    y = y.reshape(B * T, C)                           # free contiguous regroup

    out = linear(y, prep["w_proj_t"], prep["b_proj"], out_dtype=jnp.float32)
    return out.reshape(B, T, C)


# ----------------------------- pure-JAX reference -----------------------------

def reference_forward(x, raw, n_head):
    """Same math as the PyTorch module (no causal mask, matching the source).
    The bf16 cast points mirror the kernel's mixed-precision policy so the
    comparison isolates kernel structure rather than quantization noise."""
    B, T, C = x.shape
    hd = C // n_head
    half = hd // 2
    f32, bf16 = jnp.float32, jnp.bfloat16
    scale = 1.0 / math.sqrt(hd)

    def rot(t):
        return jnp.concatenate([-t[..., half:], t[..., :half]], axis=-1)

    w1 = raw["w_attn"].astype(bf16).astype(f32)
    w2 = raw["w_proj"].astype(bf16).astype(f32)
    xb = x.astype(bf16).astype(f32)

    qkv = (xb.reshape(B * T, C) @ w1.T + raw["b_attn"]).astype(bf16)
    qkv = qkv.reshape(B, T, C + 2 * hd)
    q = qkv[..., :C].reshape(B, T, n_head, hd).transpose(0, 2, 1, 3)   # (B,H,T,hd)
    k = qkv[..., C:C + hd][:, None, :, :]                              # (B,1,T,hd)
    v = qkv[..., C + hd:][:, None, :, :]

    cos, sin = rotary_tables(T, hd)
    cos = cos.astype(bf16).astype(f32)
    sin = sin.astype(bf16).astype(f32)
    qf, kf = q.astype(f32), k.astype(f32)
    qr = ((qf * cos + rot(qf) * sin) * scale).astype(bf16).astype(f32)
    kr = (kf * cos + rot(kf) * sin).astype(bf16).astype(f32)

    att = qr @ jnp.swapaxes(kr, -1, -2)            # 1/sqrt(hd) already in qr
    att = jax.nn.softmax(att, axis=-1)
    y = att.astype(bf16).astype(f32) @ v.astype(f32)
    y = y.transpose(0, 2, 1, 3).reshape(B * T, C).astype(bf16).astype(f32)
    return (y @ w2.T + raw["b_proj"]).reshape(B, T, C)


# ------------------------------------ main -------------------------------------

if __name__ == "__main__":
    # config: n_embd=256, n_head=2 -> head_dim=128 (lane-native), T=16, B=2,
    # bias=True, use_rotary=True, dropout=0.0 (source module applies no causal mask)
    B, T, C, n_head = 2, 16, 256, 2
    hd = C // n_head

    key = jax.random.PRNGKey(0)
    kx, kw1, kb1, kw2, kb2 = jax.random.split(key, 5)
    raw = {
        # nn.Linear(n_embd, n_embd + 2*head_dim) stores weight as (out, in)
        "w_attn": jax.random.normal(kw1, (C + 2 * hd, C), jnp.float32) * 0.05,
        "b_attn": jax.random.normal(kb1, (C + 2 * hd,), jnp.float32) * 0.05,
        "w_proj": jax.random.normal(kw2, (C, C), jnp.float32) * 0.05,
        "b_proj": jax.random.normal(kb2, (C,), jnp.float32) * 0.05,
    }
    prep = prepare_params(raw, T, n_head, C, dtype=jnp.bfloat16)
    x = jax.random.normal(kx, (B, T, C), jnp.float32)

    fwd = jax.jit(multi_query_attention_forward,
                  static_argnames=("n_head", "tq", "tk"))
    # tq=tk=8 -> attention grid (B, 2, 2): exercises the online-softmax kv sweep
    # and the multi-tile query axis even at this small T.
    out = jax.block_until_ready(fwd(x, prep, n_head=n_head, tq=8, tk=8))

    ref = jax.block_until_ready(reference_forward(x, raw, n_head))
    # tolerance covers bf16 operand rounding, the approx (EUP) reciprocal in the
    # softmax epilogue, and f32 accumulation-order differences.
    np.testing.assert_allclose(np.asarray(out), np.asarray(ref),
                               atol=2e-2, rtol=2e-2)
    print("KERNEL_OK")
</pallas_src>

<mosaic_0001>
module attributes {stable_mosaic.version = 11 : i64} {
  func.func @_linear_kernel(%arg0: i32, %arg1: i32, %arg2: i32, %arg3: memref<32x256xbf16, #tpu.memory_space<vmem>>, %arg4: memref<256x512xbf16, #tpu.memory_space<vmem>>, %arg5: memref<1x512xf32, #tpu.memory_space<vmem>>, %arg6: memref<32x512xbf16, #tpu.memory_space<vmem>>, %arg7: memref<32x512xf32, #tpu.memory_space<vmem>>) attributes {dimension_semantics = [#tpu.dimension_semantics<parallel>, #tpu.dimension_semantics<parallel>, #tpu.dimension_semantics<arbitrary>], iteration_bounds = array<i64: 1, 1, 1>, scalar_prefetch = 0 : i64, scratch_operands = 1 : i64, tpu.core_type = #tpu.core_type<tc>, window_params = [{transform_indices = @transform_0, window_bounds = array<i64: 32, 256>}, {transform_indices = @transform_1, window_bounds = array<i64: 256, 512>}, {transform_indices = @transform_2, window_bounds = array<i64: 1, 512>}, {transform_indices = @transform_3, window_bounds = array<i64: 32, 512>}]} {
    %c0_i32 = arith.constant 0 : i32
    %0 = arith.cmpi eq, %arg2, %c0_i32 : i32
    %1 = arith.extui %0 : i1 to i32
    %c0_i32_0 = arith.constant 0 : i32
    %2 = arith.cmpi ne, %1, %c0_i32_0 : i32
    scf.if %2 {
      %cst_10 = arith.constant 0.000000e+00 : f32
      %12 = vector.broadcast %cst_10 : f32 to vector<32x512xf32>
      %c0_11 = arith.constant 0 : index
      %c0_12 = arith.constant 0 : index
      %13 = vector.load %arg7[%c0_11, %c0_12] : memref<32x512xf32, #tpu.memory_space<vmem>>, vector<32x512xf32>
      tpu.vector_store %arg7[%c0_11, %c0_12], %12 {strides = array<i32>} : memref<32x512xf32, #tpu.memory_space<vmem>>, vector<32x512xf32>,
    } else {
    }
    %c0 = arith.constant 0 : index
    %c0_1 = arith.constant 0 : index
    %3 = vector.load %arg7[%c0, %c0_1] : memref<32x512xf32, #tpu.memory_space<vmem>>, vector<32x512xf32>
    %c0_2 = arith.constant 0 : index
    %c0_3 = arith.constant 0 : index
    %4 = vector.load %arg3[%c0_2, %c0_3] : memref<32x256xbf16, #tpu.memory_space<vmem>>, vector<32x256xbf16>
    %c0_4 = arith.constant 0 : index
    %c0_5 = arith.constant 0 : index
    %5 = vector.load %arg4[%c0_4, %c0_5] : memref<256x512xbf16, #tpu.memory_space<vmem>>, vector<256x512xbf16>
    %cst = arith.constant dense<0.000000e+00> : vector<32x512xf32>
    %6 = tpu.matmul %4, %5, %cst {dimension_numbers = #tpu.dot_dimension_numbers<[1], [0], [0], [1], [0, 0, 1, 1], [], []>} : vector<32x256xbf16>, vector<256x512xbf16>, vector<32x512xf32> -> vector<32x512xf32>
    %7 = arith.addf %3, %6 : vector<32x512xf32>
    %c0_6 = arith.constant 0 : index
    %c0_7 = arith.constant 0 : index
    %8 = vector.load %arg7[%c0_6, %c0_7] : memref<32x512xf32, #tpu.memory_space<vmem>>, vector<32x512xf32>
    tpu.vector_store %arg7[%c0_6, %c0_7], %7 {strides = array<i32>} : memref<32x512xf32, #tpu.memory_space<vmem>>, vector<32x512xf32>,
    %c0_i32_8 = arith.constant 0 : i32
    %9 = arith.cmpi eq, %arg2, %c0_i32_8 : i32
    %10 = arith.extui %9 : i1 to i32
    %c0_i32_9 = arith.constant 0 : i32
    %11 = arith.cmpi ne, %10, %c0_i32_9 : i32
    scf.if %11 {
      %c0_10 = arith.constant 0 : index
      %c0_11 = arith.constant 0 : index
      %12 = vector.load %arg7[%c0_10, %c0_11] : memref<32x512xf32, #tpu.memory_space<vmem>>, vector<32x512xf32>
      %c0_12 = arith.constant 0 : index
      %c0_13 = arith.constant 0 : index
      %13 = vector.load %arg5[%c0_12, %c0_13] : memref<1x512xf32, #tpu.memory_space<vmem>>, vector<1x512xf32>
      %14 = vector.broadcast %13 : vector<1x512xf32> to vector<32x512xf32>
      %15 = arith.addf %12, %14 : vector<32x512xf32>
      %16 = arith.truncf %15 : vector<32x512xf32> to vector<32x512xbf16>
      %c0_14 = arith.constant 0 : index
      %c0_15 = arith.constant 0 : index
      %17 = vector.load %arg6[%c0_14, %c0_15] : memref<32x512xbf16, #tpu.memory_space<vmem>>, vector<32x512xbf16>
      tpu.vector_store %arg6[%c0_14, %c0_15], %16 {strides = array<i32>} : memref<32x512xbf16, #tpu.memory_space<vmem>>, vector<32x512xbf16>,
    } else {
    }
    return
  }
  func.func @transform_0(%arg0: i32, %arg1: i32, %arg2: i32) -> (i32, i32) {
    %c0_i32 = arith.constant 0 : i32
    return %arg0, %arg2 : i32, i32
  }
  func.func @transform_1(%arg0: i32, %arg1: i32, %arg2: i32) -> (i32, i32) {
    %c0_i32 = arith.constant 0 : i32
    return %arg2, %arg1 : i32, i32
  }
  func.func @transform_2(%arg0: i32, %arg1: i32, %arg2: i32) -> (i32, i32) {
    %c0_i32 = arith.constant 0 : i32
    %c0_i32_0 = arith.constant 0 : i32
    return %c0_i32, %arg1 : i32, i32
  }
  func.func @transform_3(%arg0: i32, %arg1: i32, %arg2: i32) -> (i32, i32) {
    %c0_i32 = arith.constant 0 : i32
    return %arg0, %arg1 : i32, i32
  }
}

module attributes {stable_mosaic.version = 11 : i64} {
  func.func @_mqa_flash_kernel(%arg0: i32, %arg1: i32, %arg2: i32, %arg3: memref<1x16x128xbf16, #tpu.memory_space<vmem>>, %arg4: memref<1x8x128xbf16, #tpu.memory_space<vmem>>, %arg5: memref<1x8x128xbf16, #tpu.memory_space<vmem>>, %arg6: memref<16x128xbf16, #tpu.memory_space<vmem>>, %arg7: memref<16x128xbf16, #tpu.memory_space<vmem>>, %arg8: memref<8x128xbf16, #tpu.memory_space<vmem>>, %arg9: memref<8x128xbf16, #tpu.memory_space<vmem>>, %arg10: memref<1x16x128xbf16, #tpu.memory_space<vmem>>, %arg11: memref<16x128xbf16, #tpu.memory_space<vmem>>, %arg12: memref<16x1xf32, #tpu.memory_space<vmem>>, %arg13: memref<16x1xf32, #tpu.memory_space<vmem>>, %arg14: memref<16x128xf32, #tpu.memory_space<vmem>>) attributes {dimension_semantics = [#tpu.dimension_semantics<parallel>, #tpu.dimension_semantics<parallel>, #tpu.dimension_semantics<arbitrary>], iteration_bounds = array<i64: 2, 2, 2>, scalar_prefetch = 0 : i64, scratch_operands = 4 : i64, tpu.core_type = #tpu.core_type<tc>, window_params = [{transform_indices = @transform_0, window_bounds = array<i64: 1, 16, 128>}, {transform_indices = @transform_1, window_bounds = array<i64: 1, 8, 128>}, {transform_indices = @transform_2, window_bounds = array<i64: 1, 8, 128>}, {transform_indices = @transform_3, window_bounds = array<i64: 16, 128>}, {transform_indices = @transform_4, window_bounds = array<i64: 16, 128>}, {transform_indices = @transform_5, window_bounds = array<i64: 8, 128>}, {transform_indices = @transform_6, window_bounds = array<i64: 8, 128>}, {transform_indices = @transform_7, window_bounds = array<i64: 1, 16, 128>}]} {
    %c0_i32 = arith.constant 0 : i32
    %0 = arith.cmpi eq, %arg2, %c0_i32 : i32
    %1 = arith.extui %0 : i1 to i32
    %c0_i32_0 = arith.constant 0 : i32
    %2 = arith.cmpi ne, %1, %c0_i32_0 : i32
    scf.if %2 {
      %c0_28 = arith.constant 0 : index
      %c0_29 = arith.constant 0 : index
      %c0_30 = arith.constant 0 : index
      %45 = vector.load %arg3[%c0_28, %c0_29, %c0_30] : memref<1x16x128xbf16, #tpu.memory_space<vmem>>, vector<1x16x128xbf16>
      %46 = vector.shape_cast %45 : vector<1x16x128xbf16> to vector<16x128xbf16>
      %47 = arith.extf %46 : vector<16x128xbf16> to vector<16x128xf32>
      %c0_31 = arith.constant 0 : index
      %c0_32 = arith.constant 0 : index
      %48 = vector.load %arg6[%c0_31, %c0_32] : memref<16x128xbf16, #tpu.memory_space<vmem>>, vector<16x128xbf16>
      %49 = arith.extf %48 : vector<16x128xbf16> to vector<16x128xf32>
      %c0_33 = arith.constant 0 : index
      %c0_34 = arith.constant 0 : index
      %50 = vector.load %arg7[%c0_33, %c0_34] : memref<16x128xbf16, #tpu.memory_space<vmem>>, vector<16x128xbf16>
      %51 = arith.extf %50 : vector<16x128xbf16> to vector<16x128xf32>
      %52 = arith.mulf %47, %49 : vector<16x128xf32>
      %c64_i32_35 = arith.constant 64 : i32
      %53 = tpu.dynamic_rotate %47 by %c64_i32_35 dim 1 : vector<16x128xf32>, i32 -> vector<16x128xf32>
      %54 = arith.mulf %53, %51 : vector<16x128xf32>
      %55 = arith.addf %52, %54 : vector<16x128xf32>
      %cst_36 = arith.constant 0.0883883461 : f32
      %56 = vector.broadcast %cst_36 : f32 to vector<16x128xf32>
      %57 = arith.mulf %55, %56 : vector<16x128xf32>
      %58 = arith.truncf %57 : vector<16x128xf32> to vector<16x128xbf16>
      %c0_37 = arith.constant 0 : index
      %c0_38 = arith.constant 0 : index
      %59 = vector.load %arg11[%c0_37, %c0_38] : memref<16x128xbf16, #tpu.memory_space<vmem>>, vector<16x128xbf16>
      tpu.vector_store %arg11[%c0_37, %c0_38], %58 {strides = array<i32>} : memref<16x128xbf16, #tpu.memory_space<vmem>>, vector<16x128xbf16>,
      %cst_39 = arith.constant 0xFF800000 : f32
      %60 = vector.broadcast %cst_39 : f32 to vector<16x1xf32>
      %c0_40 = arith.constant 0 : index
      %c0_41 = arith.constant 0 : index
      %61 = vector.load %arg12[%c0_40, %c0_41] : memref<16x1xf32, #tpu.memory_space<vmem>>, vector<16x1xf32>
      tpu.vector_store %arg12[%c0_40, %c0_41], %60 {strides = array<i32>} : memref<16x1xf32, #tpu.memory_space<vmem>>, vector<16x1xf32>,
      %cst_42 = arith.constant 0.000000e+00 : f32
      %62 = vector.broadcast %cst_42 : f32 to vector<16x1xf32>
      %c0_43 = arith.constant 0 : index
      %c0_44 = arith.constant 0 : index
      %63 = vector.load %arg13[%c0_43, %c0_44] : memref<16x1xf32, #tpu.memory_space<vmem>>, vector<16x1xf32>
      tpu.vector_store %arg13[%c0_43, %c0_44], %62 {strides = array<i32>} : memref<16x1xf32, #tpu.memory_space<vmem>>, vector<16x1xf32>,
      %cst_45 = arith.constant 0.000000e+00 : f32
      %64 = vector.broadcast %cst_45 : f32 to vector<16x128xf32>
      %c0_46 = arith.constant 0 : index
      %c0_47 = arith.constant 0 : index
      %65 = vector.load %arg14[%c0_46, %c0_47] : memref<16x128xf32, #tpu.memory_space<vmem>>, vector<16x128xf32>
      tpu.vector_store %arg14[%c0_46, %c0_47], %64 {strides = array<i32>} : memref<16x128xf32, #tpu.memory_space<vmem>>, vector<16x128xf32>,
    } else {
    }
    %c0 = arith.constant 0 : index
    %c0_1 = arith.constant 0 : index
    %c0_2 = arith.constant 0 : index
    %3 = vector.load %arg4[%c0, %c0_1, %c0_2] : memref<1x8x128xbf16, #tpu.memory_space<vmem>>, vector<1x8x128xbf16>
    %4 = vector.shape_cast %3 : vector<1x8x128xbf16> to vector<8x128xbf16>
    %5 = arith.extf %4 : vector<8x128xbf16> to vector<8x128xf32>
    %c0_3 = arith.constant 0 : index
    %c0_4 = arith.constant 0 : index
    %6 = vector.load %arg8[%c0_3, %c0_4] : memref<8x128xbf16, #tpu.memory_space<vmem>>, vector<8x128xbf16>
    %7 = arith.extf %6 : vector<8x128xbf16> to vector<8x128xf32>
    %8 = arith.mulf %5, %7 : vector<8x128xf32>
    %c64_i32 = arith.constant 64 : i32
    %9 = tpu.dynamic_rotate %5 by %c64_i32 dim 1 : vector<8x128xf32>, i32 -> vector<8x128xf32>
    %c0_5 = arith.constant 0 : index
    %c0_6 = arith.constant 0 : index
    %10 = vector.load %arg9[%c0_5, %c0_6] : memref<8x128xbf16, #tpu.memory_space<vmem>>, vector<8x128xbf16>
    %11 = arith.extf %10 : vector<8x128xbf16> to vector<8x128xf32>
    %12 = arith.mulf %9, %11 : vector<8x128xf32>
    %13 = arith.addf %8, %12 : vector<8x128xf32>
    %14 = arith.truncf %13 : vector<8x128xf32> to vector<8x128xbf16>
    %c0_7 = arith.constant 0 : index
    %c0_8 = arith.constant 0 : index
    %15 = vector.load %arg11[%c0_7, %c0_8] : memref<16x128xbf16, #tpu.memory_space<vmem>>, vector<16x128xbf16>
    %cst = arith.constant dense<0.000000e+00> : vector<16x8xf32>
    %16 = tpu.matmul %15, %14, %cst {dimension_numbers = #tpu.dot_dimension_numbers<[1], [1], [0], [0], [0, 0, 1, 0], [], []>} : vector<16x128xbf16>, vector<8x128xbf16>, vector<16x8xf32> -> vector<16x8xf32>
    %c0_9 = arith.constant 0 : index
    %c0_10 = arith.constant 0 : index
    %17 = vector.load %arg12[%c0_9, %c0_10] : memref<16x1xf32, #tpu.memory_space<vmem>>, vector<16x1xf32>
    %cst_11 = arith.constant dense<0xFF800000> : vector<16xf32>
    %18 = vector.multi_reduction <maximumf>, %16, %cst_11 [1] : vector<16x8xf32> to vector<16xf32>
    %19 = vector.shape_cast %18 : vector<16xf32> to vector<16x1xf32>
    %20 = arith.maximumf %17, %19 : vector<16x1xf32>
    %21 = arith.subf %17, %20 : vector<16x1xf32>
    %22 = math.exp %21 : vector<16x1xf32>
    %23 = vector.broadcast %20 : vector<16x1xf32> to vector<16x8xf32>
    %24 = arith.subf %16, %23 : vector<16x8xf32>
    %25 = math.exp %24 : vector<16x8xf32>
    %c0_12 = arith.constant 0 : index
    %c0_13 = arith.constant 0 : index
    %26 = vector.load %arg13[%c0_12, %c0_13] : memref<16x1xf32, #tpu.memory_space<vmem>>, vector<16x1xf32>
    %27 = arith.mulf %22, %26 : vector<16x1xf32>
    %cst_14 = arith.constant dense<0.000000e+00> : vector<16xf32>
    %28 = vector.multi_reduction <add>, %25, %cst_14 [1] : vector<16x8xf32> to vector<16xf32>
    %29 = vector.shape_cast %28 : vector<16xf32> to vector<16x1xf32>
    %30 = arith.addf %27, %29 : vector<16x1xf32>
    %c0_15 = arith.constant 0 : index
    %c0_16 = arith.constant 0 : index
    %31 = vector.load %arg13[%c0_15, %c0_16] : memref<16x1xf32, #tpu.memory_space<vmem>>, vector<16x1xf32>
    tpu.vector_store %arg13[%c0_15, %c0_16], %30 {strides = array<i32>} : memref<16x1xf32, #tpu.memory_space<vmem>>, vector<16x1xf32>,
    %c0_17 = arith.constant 0 : index
    %c0_18 = arith.constant 0 : index
    %32 = vector.load %arg14[%c0_17, %c0_18] : memref<16x128xf32, #tpu.memory_space<vmem>>, vector<16x128xf32>
    %33 = vector.broadcast %22 : vector<16x1xf32> to vector<16x128xf32>
    %34 = arith.mulf %33, %32 : vector<16x128xf32>
    %35 = arith.truncf %25 : vector<16x8xf32> to vector<16x8xbf16>
    %c0_19 = arith.constant 0 : index
    %c0_20 = arith.constant 0 : index
    %c0_21 = arith.constant 0 : index
    %36 = vector.load %arg5[%c0_19, %c0_20, %c0_21] : memref<1x8x128xbf16, #tpu.memory_space<vmem>>, vector<1x8x128xbf16>
    %37 = vector.shape_cast %36 : vector<1x8x128xbf16> to vector<8x128xbf16>
    %cst_22 = arith.constant dense<0.000000e+00> : vector<16x128xf32>
    %38 = tpu.matmul %35, %37, %cst_22 {dimension_numbers = #tpu.dot_dimension_numbers<[1], [0], [0], [1], [0, 0, 1, 1], [], []>} : vector<16x8xbf16>, vector<8x128xbf16>, vector<16x128xf32> -> vector<16x128xf32>
    %39 = arith.addf %34, %38 : vector<16x128xf32>
    %c0_23 = arith.constant 0 : index
    %c0_24 = arith.constant 0 : index
    %40 = vector.load %arg14[%c0_23, %c0_24] : memref<16x128xf32, #tpu.memory_space<vmem>>, vector<16x128xf32>
    tpu.vector_store %arg14[%c0_23, %c0_24], %39 {strides = array<i32>} : memref<16x128xf32, #tpu.memory_space<vmem>>, vector<16x128xf32>,
    %c0_25 = arith.constant 0 : index
    %c0_26 = arith.constant 0 : index
    %41 = vector.load %arg12[%c0_25, %c0_26] : memref<16x1xf32, #tpu.memory_space<vmem>>, vector<16x1xf32>
    tpu.vector_store %arg12[%c0_25, %c0_26], %20 {strides = array<i32>} : memref<16x1xf32, #tpu.memory_space<vmem>>, vector<16x1xf32>,
    %c1_i32 = arith.constant 1 : i32
    %42 = arith.cmpi eq, %arg2, %c1_i32 : i32
    %43 = arith.extui %42 : i1 to i32
    %c0_i32_27 = arith.constant 0 : i32
    %44 = arith.cmpi ne, %43, %c0_i32_27 : i32
    scf.if %44 {
      %c0_28 = arith.constant 0 : index
      %c0_29 = arith.constant 0 : index
      %45 = vector.load %arg13[%c0_28, %c0_29] : memref<16x1xf32, #tpu.memory_space<vmem>>, vector<16x1xf32>
      %46 = tpu.reciprocal %45 {approx = true} : vector<16x1xf32> -> vector<16x1xf32>
      %c0_30 = arith.constant 0 : index
      %c0_31 = arith.constant 0 : index
      %47 = vector.load %arg14[%c0_30, %c0_31] : memref<16x128xf32, #tpu.memory_space<vmem>>, vector<16x128xf32>
      %48 = vector.broadcast %46 : vector<16x1xf32> to vector<16x128xf32>
      %49 = arith.mulf %47, %48 : vector<16x128xf32>
      %50 = arith.truncf %49 : vector<16x128xf32> to vector<16x128xbf16>
      %c0_32 = arith.constant 0 : index
      %c0_33 = arith.constant 0 : index
      %c0_34 = arith.constant 0 : index
      %51 = vector.load %arg10[%c0_32, %c0_33, %c0_34] : memref<1x16x128xbf16, #tpu.memory_space<vmem>>, vector<1x16x128xbf16>
      %52 = vector.shape_cast %51 : vector<1x16x128xbf16> to vector<16x128xbf16>
      %53 = vector.shape_cast %50 : vector<16x128xbf16> to vector<1x16x128xbf16>
      tpu.vector_store %arg10[%c0_32, %c0_33, %c0_34], %53 {strides = array<i32>} : memref<1x16x128xbf16, #tpu.memory_space<vmem>>, vector<1x16x128xbf16>,
    } else {
    }
    return
  }
  func.func @transform_0(%arg0: i32, %arg1: i32, %arg2: i32) -> (i32, i32, i32) {
    %c0_i32 = arith.constant 0 : i32
    %c0_i32_0 = arith.constant 0 : i32
    return %arg0, %arg1, %c0_i32 : i32, i32, i32
  }
  func.func @transform_1(%arg0: i32, %arg1: i32, %arg2: i32) -> (i32, i32, i32) {
    %c0_i32 = arith.constant 0 : i32
    %c0_i32_0 = arith.constant 0 : i32
    return %arg0, %arg2, %c0_i32 : i32, i32, i32
  }
  func.func @transform_2(%arg0: i32, %arg1: i32, %arg2: i32) -> (i32, i32, i32) {
    %c0_i32 = arith.constant 0 : i32
    %c0_i32_0 = arith.constant 0 : i32
    return %arg0, %arg2, %c0_i32 : i32, i32, i32
  }
  func.func @transform_3(%arg0: i32, %arg1: i32, %arg2: i32) -> (i32, i32) {
    %c0_i32 = arith.constant 0 : i32
    %c0_i32_0 = arith.constant 0 : i32
    return %arg1, %c0_i32 : i32, i32
  }
  func.func @transform_4(%arg0: i32, %arg1: i32, %arg2: i32) -> (i32, i32) {
    %c0_i32 = arith.constant 0 : i32
    %c0_i32_0 = arith.constant 0 : i32
    return %arg1, %c0_i32 : i32, i32
  }
  func.func @transform_5(%arg0: i32, %arg1: i32, %arg2: i32) -> (i32, i32) {
    %c0_i32 = arith.constant 0 : i32
    %c0_i32_0 = arith.constant 0 : i32
    return %arg2, %c0_i32 : i32, i32
  }
  func.func @transform_6(%arg0: i32, %arg1: i32, %arg2: i32) -> (i32, i32) {
    %c0_i32 = arith.constant 0 : i32
    %c0_i32_0 = arith.constant 0 : i32
    return %arg2, %c0_i32 : i32, i32
  }
  func.func @transform_7(%arg0: i32, %arg1: i32, %arg2: i32) -> (i32, i32, i32) {
    %c0_i32 = arith.constant 0 : i32
    %c0_i32_0 = arith.constant 0 : i32
    return %arg0, %arg1, %c0_i32 : i32, i32, i32
  }
}

module attributes {stable_mosaic.version = 11 : i64} {
  func.func @_linear_kernel(%arg0: i32, %arg1: i32, %arg2: i32, %arg3: memref<32x256xbf16, #tpu.memory_space<vmem>>, %arg4: memref<256x256xbf16, #tpu.memory_space<vmem>>, %arg5: memref<1x256xf32, #tpu.memory_space<vmem>>, %arg6: memref<32x256xf32, #tpu.memory_space<vmem>>, %arg7: memref<32x256xf32, #tpu.memory_space<vmem>>) attributes {dimension_semantics = [#tpu.dimension_semantics<parallel>, #tpu.dimension_semantics<parallel>, #tpu.dimension_semantics<arbitrary>], iteration_bounds = array<i64: 1, 1, 1>, scalar_prefetch = 0 : i64, scratch_operands = 1 : i64, tpu.core_type = #tpu.core_type<tc>, window_params = [{transform_indices = @transform_0, window_bounds = array<i64: 32, 256>}, {transform_indices = @transform_1, window_bounds = array<i64: 256, 256>}, {transform_indices = @transform_2, window_bounds = array<i64: 1, 256>}, {transform_indices = @transform_3, window_bounds = array<i64: 32, 256>}]} {
    %c0_i32 = arith.constant 0 : i32
    %0 = arith.cmpi eq, %arg2, %c0_i32 : i32
    %1 = arith.extui %0 : i1 to i32
    %c0_i32_0 = arith.constant 0 : i32
    %2 = arith.cmpi ne, %1, %c0_i32_0 : i32
    scf.if %2 {
      %cst_10 = arith.constant 0.000000e+00 : f32
      %12 = vector.broadcast %cst_10 : f32 to vector<32x256xf32>
      %c0_11 = arith.constant 0 : index
      %c0_12 = arith.constant 0 : index
      %13 = vector.load %arg7[%c0_11, %c0_12] : memref<32x256xf32, #tpu.memory_space<vmem>>, vector<32x256xf32>
      tpu.vector_store %arg7[%c0_11, %c0_12], %12 {strides = array<i32>} : memref<32x256xf32, #tpu.memory_space<vmem>>, vector<32x256xf32>,
    } else {
    }
    %c0 = arith.constant 0 : index
    %c0_1 = arith.constant 0 : index
    %3 = vector.load %arg7[%c0, %c0_1] : memref<32x256xf32, #tpu.memory_space<vmem>>, vector<32x256xf32>
    %c0_2 = arith.constant 0 : index
    %c0_3 = arith.constant 0 : index
    %4 = vector.load %arg3[%c0_2, %c0_3] : memref<32x256xbf16, #tpu.memory_space<vmem>>, vector<32x256xbf16>
    %c0_4 = arith.constant 0 : index
    %c0_5 = arith.constant 0 : index
    %5 = vector.load %arg4[%c0_4, %c0_5] : memref<256x256xbf16, #tpu.memory_space<vmem>>, vector<256x256xbf16>
    %cst = arith.constant dense<0.000000e+00> : vector<32x256xf32>
    %6 = tpu.matmul %4, %5, %cst {dimension_numbers = #tpu.dot_dimension_numbers<[1], [0], [0], [1], [0, 0, 1, 1], [], []>} : vector<32x256xbf16>, vector<256x256xbf16>, vector<32x256xf32> -> vector<32x256xf32>
    %7 = arith.addf %3, %6 : vector<32x256xf32>
    %c0_6 = arith.constant 0 : index
    %c0_7 = arith.constant 0 : index
    %8 = vector.load %arg7[%c0_6, %c0_7] : memref<32x256xf32, #tpu.memory_space<vmem>>, vector<32x256xf32>
    tpu.vector_store %arg7[%c0_6, %c0_7], %7 {strides = array<i32>} : memref<32x256xf32, #tpu.memory_space<vmem>>, vector<32x256xf32>,
    %c0_i32_8 = arith.constant 0 : i32
    %9 = arith.cmpi eq, %arg2, %c0_i32_8 : i32
    %10 = arith.extui %9 : i1 to i32
    %c0_i32_9 = arith.constant 0 : i32
    %11 = arith.cmpi ne, %10, %c0_i32_9 : i32
    scf.if %11 {
      %c0_10 = arith.constant 0 : index
      %c0_11 = arith.constant 0 : index
      %12 = vector.load %arg7[%c0_10, %c0_11] : memref<32x256xf32, #tpu.memory_space<vmem>>, vector<32x256xf32>
      %c0_12 = arith.constant 0 : index
      %c0_13 = arith.constant 0 : index
      %13 = vector.load %arg5[%c0_12, %c0_13] : memref<1x256xf32, #tpu.memory_space<vmem>>, vector<1x256xf32>
      %14 = vector.broadcast %13 : vector<1x256xf32> to vector<32x256xf32>
      %15 = arith.addf %12, %14 : vector<32x256xf32>
      %c0_14 = arith.constant 0 : index
      %c0_15 = arith.constant 0 : index
      %16 = vector.load %arg6[%c0_14, %c0_15] : memref<32x256xf32, #tpu.memory_space<vmem>>, vector<32x256xf32>
      tpu.vector_store %arg6[%c0_14, %c0_15], %15 {strides = array<i32>} : memref<32x256xf32, #tpu.memory_space<vmem>>, vector<32x256xf32>,
    } else {
    }
    return
  }
  func.func @transform_0(%arg0: i32, %arg1: i32, %arg2: i32) -> (i32, i32) {
    %c0_i32 = arith.constant 0 : i32
    return %arg0, %arg2 : i32, i32
  }
  func.func @transform_1(%arg0: i32, %arg1: i32, %arg2: i32) -> (i32, i32) {
    %c0_i32 = arith.constant 0 : i32
    return %arg2, %arg1 : i32, i32
  }
  func.func @transform_2(%arg0: i32, %arg1: i32, %arg2: i32) -> (i32, i32) {
    %c0_i32 = arith.constant 0 : i32
    %c0_i32_0 = arith.constant 0 : i32
    return %c0_i32, %arg1 : i32, i32
  }
  func.func @transform_3(%arg0: i32, %arg1: i32, %arg2: i32) -> (i32, i32) {
    %c0_i32 = arith.constant 0 : i32
    return %arg0, %arg1 : i32, i32
  }
}

</mosaic_0001>

<bundles_post_ra>
// kernel: multi_query_attention_forward.3
= control target key start
LH: loop header
LB: loop body
LE: loop exit
PB: predicated region body
PF: predicated region fallthrough
CT: control target
= control target key end

     0   :  { %8 = vsyncpa [#allocation4], 0  ;;  %s941_s12 = smov [#allocation3]   ;;  %s1015_s0 = inlined_call_operand.vmem [shape: bf16[32,256], index: 0, kind: input, shape index: {}]   ;;  %s1016_s1 = inlined_call_operand.hbm [shape: bf16[256,512], index: 1, kind: input, shape index: {}]   ;;  %s1017_s2 = inlined_call_operand.vmem [shape: f32[1,512], index: 2, kind: input, shape index: {}]   ;;  %s1018_s3 = inlined_call_operand.vmem [shape: bf16[32,512], index: 3, kind: output, shape index: {}]  }
   0x1   :  { %s16_s13 = sshll.u32 %s941_s12, 4  ;;  %s917_s16 = scalar_lea.hbm %s1016_s1, 8192  ;;  %s17_s13 = int_to_ptr.vmem [resolvable:$true] %s16_s13 }
   0x2   :  { %p918_p0 = scmp.ne.s32.totalorder %s1016_s1, %s917_s16  ;;  %p921_p1 = scmp.lt.u32.totalorder %s917_s16, %s1016_s1 }
   0x4   :  { %p923_p2 = pnand %p921_p1, %p918_p0 }
   0x6   :  { %926 = shalt.err (!%p923_p2)
}
   0x7   :  { %s927_s21 = scalar_lea.vmem %s17_s13, 8192  ;;  %p932_p4 = scmp.lt.s32.totalorder %s17_s13, %s17_s13 }
   0x8   :  { %p928_p3 = scmp.ne.s32.totalorder %s17_s13, %s927_s21  ;;  %p933_p5 = scmp.lt.s32.totalorder %s927_s21, %s927_s21 }
   0xa   :  { %p934_p6 = por %p933_p5, %p932_p4 }
   0xc   :  { %p935_p7 = pnand %p934_p6, %p928_p3 }
   0xe   :  { %938 = shalt.err (!%p935_p7)
}
   0xf   :  { %s942_s22 = smov 256   ;;  %s943_s23 = smov 16  }
  0x10   :  { %22 = dma.hbm_to_vmem [thread:$0]  %s1016_s1, 8192, %s17_s13, [#allocation4], %s942_s22, %s942_s22, %s943_s23  }
  0x11   :  { %939 = dma.done.wait [#allocation4], 8192  }
  0x12   :  { %940 = vsyncadd [#allocation4], 4294959104  ;;  %v815_v0 = vld [vmem:[#allocation3 + $0x4] ss:$16 sps:$4 sm:$0xff]   ;;  %v817_v1 = vld [vmem:[#allocation3 + $0xc] ss:$16 sps:$4 sm:$0xff]  }
  0x13   :  { %472 = vmatprep.subr.bf16.mxu0 %v815_v0  ;;  %v819_v2 = vld [vmem:[#allocation3] ss:$16 sps:$4 sm:$0xff]   ;;  %v820_v3 = vld [vmem:[#allocation3 + $0x8] ss:$16 sps:$4 sm:$0xff]   ;;  %525 = vmatprep.subr.bf16.mxu1 %v817_v1  ;;  %v821_v4 = vld [vmem:[#allocation3 + $0x24] ss:$16 sps:$4 sm:$0xff]  }
  0x14   :  { %473 = vmatpush1.bf16.msra.mxu0 %v819_v2  ;;  %526 = vmatpush1.bf16.msra.mxu1 %v820_v3  ;;  %v823_v5 = vld [vmem:[#allocation3 + $0x2c] ss:$16 sps:$4 sm:$0xff]   ;;  %v825_v6 = vld [vmem:[#allocation3 + $0x20] ss:$16 sps:$4 sm:$0xff]   ;;  %v826_v7 = vld [vmem:[#allocation3 + $0x28] ss:$16 sps:$4 sm:$0xff]  }
  0x15   :  { %474 = vmatprep.subr.bf16.mxu0 %v821_v4  ;;  %527 = vmatprep.subr.bf16.mxu1 %v823_v5  ;;  %v827_v8 = vld [vmem:[#allocation3 + $0x44] ss:$16 sps:$4 sm:$0xff]   ;;  %v829_v9 = vld [vmem:[#allocation3 + $0x4c] ss:$16 sps:$4 sm:$0xff]   ;;  %v831_v10 = vld [vmem:[#allocation3 + $0x40] ss:$16 sps:$4 sm:$0xff]   ;;  %v631_v4 = vlaneseq }
  0x16   :  { %v832_v11 = vld [vmem:[#allocation3 + $0x48] ss:$16 sps:$4 sm:$0xff]   ;;  %v833_v12 = vld [vmem:[#allocation3 + $0x64] ss:$16 sps:$4 sm:$0xff]   ;;  %v835_v13 = vld [vmem:[#allocation3 + $0x6c] ss:$16 sps:$4 sm:$0xff]  }
  0x17   :  { %v837_v14 = vld [vmem:[#allocation3 + $0x60] ss:$16 sps:$4 sm:$0xff]   ;;  %v838_v15 = vld [vmem:[#allocation3 + $0x68] ss:$16 sps:$4 sm:$0xff]   ;;  %v839_v16 = vld [vmem:[#allocation3 + $0x84] ss:$16 sps:$4 sm:$0xff]  }
  0x18   :  { %475 = vmatpush1.bf16.msra.mxu0 %v825_v6  ;;  %528 = vmatpush1.bf16.msra.mxu1 %v826_v7  ;;  %v841_v17 = vld [vmem:[#allocation3 + $0x8c] ss:$16 sps:$4 sm:$0xff]   ;;  %v843_v18 = vld [vmem:[#allocation3 + $0x80] ss:$16 sps:$4 sm:$0xff]   ;;  %v844_v19 = vld [vmem:[#allocation3 + $0x88] ss:$16 sps:$4 sm:$0xff]  }
  0x19   :  { %476 = vmatprep.subr.bf16.mxu0 %v827_v8  ;;  %529 = vmatprep.subr.bf16.mxu1 %v829_v9  ;;  %v845_v20 = vld [vmem:[#allocation3 + $0xa4] ss:$16 sps:$4 sm:$0xff]   ;;  %v847_v21 = vld [vmem:[#allocation3 + $0xac] ss:$16 sps:$4 sm:$0xff]   ;;  %v849_v22 = vld [vmem:[#allocation3 + $0xa0] ss:$16 sps:$4 sm:$0xff]  }
  0x1a   :  { %v850_v23 = vld [vmem:[#allocation3 + $0xa8] ss:$16 sps:$4 sm:$0xff]   ;;  %v851_v24 = vld [vmem:[#allocation3 + $0xc4] ss:$16 sps:$4 sm:$0xff]   ;;  %v853_v25 = vld [vmem:[#allocation3 + $0xcc] ss:$16 sps:$4 sm:$0xff]  }
  0x1b   :  { %v855_v26 = vld [vmem:[#allocation3 + $0xc0] ss:$16 sps:$4 sm:$0xff]   ;;  %v856_v27 = vld [vmem:[#allocation3 + $0xc8] ss:$16 sps:$4 sm:$0xff]   ;;  %v857_v28 = vld [vmem:[#allocation3 + $0xe4] ss:$16 sps:$4 sm:$0xff]  }
  0x1c   :  { %477 = vmatpush1.bf16.msra.mxu0 %v831_v10  ;;  %530 = vmatpush1.bf16.msra.mxu1 %v832_v11  ;;  %v859_v29 = vld [vmem:[#allocation3 + $0xec] ss:$16 sps:$4 sm:$0xff]   ;;  %v861_v30 = vld [vmem:[#allocation3 + $0xe0] ss:$16 sps:$4 sm:$0xff]   ;;  %v862_v31 = vld [vmem:[#allocation3 + $0xe8] ss:$16 sps:$4 sm:$0xff]  }
  0x1d   :  { %478 = vmatprep.subr.bf16.mxu0 %v833_v12  ;;  %531 = vmatprep.subr.bf16.mxu1 %v835_v13  ;;  %v863_v32 = vld [vmem:[#allocation3 + $0x104] ss:$16 sps:$4 sm:$0xff]   ;;  %v865_v33 = vld [vmem:[#allocation3 + $0x10c] ss:$16 sps:$4 sm:$0xff]   ;;  %v867_v34 = vld [vmem:[#allocation3 + $0x100] ss:$16 sps:$4 sm:$0xff]  }
  0x1e   :  { %v868_v35 = vld [vmem:[#allocation3 + $0x108] ss:$16 sps:$4 sm:$0xff]   ;;  %v869_v36 = vld [vmem:[#allocation3 + $0x124] ss:$16 sps:$4 sm:$0xff]   ;;  %v871_v37 = vld [vmem:[#allocation3 + $0x12c] ss:$16 sps:$4 sm:$0xff]  }
  0x1f   :  { %v873_v38 = vld [vmem:[#allocation3 + $0x120] ss:$16 sps:$4 sm:$0xff]   ;;  %v874_v39 = vld [vmem:[#allocation3 + $0x128] ss:$16 sps:$4 sm:$0xff]   ;;  %v875_v40 = vld [vmem:[#allocation3 + $0x144] ss:$16 sps:$4 sm:$0xff]  }
  0x20   :  { %479 = vmatpush1.bf16.msra.mxu0 %v837_v14  ;;  %532 = vmatpush1.bf16.msra.mxu1 %v838_v15  ;;  %v877_v41 = vld [vmem:[#allocation3 + $0x14c] ss:$16 sps:$4 sm:$0xff]   ;;  %v879_v42 = vld [vmem:[#allocation3 + $0x140] ss:$16 sps:$4 sm:$0xff]   ;;  %v880_v43 = vld [vmem:[#allocation3 + $0x148] ss:$16 sps:$4 sm:$0xff]  }
  0x21   :  { %480 = vmatprep.subr.bf16.mxu0 %v839_v16  ;;  %533 = vmatprep.subr.bf16.mxu1 %v841_v17  ;;  %v881_v44 = vld [vmem:[#allocation3 + $0x164] ss:$16 sps:$4 sm:$0xff]   ;;  %v883_v45 = vld [vmem:[#allocation3 + $0x16c] ss:$16 sps:$4 sm:$0xff]   ;;  %v885_v46 = vld [vmem:[#allocation3 + $0x160] ss:$16 sps:$4 sm:$0xff]  }
  0x22   :  { %v913_v47 = vld [vmem:[%s1015_s0 + $0x4] ss:$8 sps:$4 sm:$0xff]   ;;  %v886_v48 = vld [vmem:[#allocation3 + $0x168] ss:$16 sps:$4 sm:$0xff]   ;;  %v891_v51 = vld [vmem:[#allocation3 + $0x180] ss:$16 sps:$4 sm:$0xff]  }
  0x23   :  { %v887_v49 = vld [vmem:[#allocation3 + $0x184] ss:$16 sps:$4 sm:$0xff]   ;;  %v889_v50 = vld [vmem:[#allocation3 + $0x18c] ss:$16 sps:$4 sm:$0xff]   ;;  %504 = vmatprep.mubr.bf16.mxu0 %v913_v47  ;;  %557 = vmatprep.mubr.bf16.mxu1 %v913_v47  ;;  %v892_v52 = vld [vmem:[#allocation3 + $0x188] ss:$16 sps:$4 sm:$0xff]  }
  0x24   :  { %481 = vmatpush1.bf16.msra.mxu0 %v843_v18  ;;  %534 = vmatpush1.bf16.msra.mxu1 %v844_v19  ;;  %v893_v53 = vld [vmem:[#allocation3 + $0x1a4] ss:$16 sps:$4 sm:$0xff]   ;;  %v895_v54 = vld [vmem:[#allocation3 + $0x1ac] ss:$16 sps:$4 sm:$0xff]   ;;  %v897_v55 = vld [vmem:[#allocation3 + $0x1a0] ss:$16 sps:$4 sm:$0xff]  }
  0x25   :  { %482 = vmatprep.subr.bf16.mxu0 %v845_v20  ;;  %535 = vmatprep.subr.bf16.mxu1 %v847_v21  ;;  %v898_v56 = vld [vmem:[#allocation3 + $0x1a8] ss:$16 sps:$4 sm:$0xff]   ;;  %v899_v57 = vld [vmem:[#allocation3 + $0x1c4] ss:$16 sps:$4 sm:$0xff]   ;;  %v901_v58 = vld [vmem:[#allocation3 + $0x1cc] ss:$16 sps:$4 sm:$0xff]  }
  0x26   :  { %v903_v59 = vld [vmem:[#allocation3 + $0x1c0] ss:$16 sps:$4 sm:$0xff]   ;;  %v904_v60 = vld [vmem:[#allocation3 + $0x1c8] ss:$16 sps:$4 sm:$0xff]   ;;  %v905_v61 = vld [vmem:[#allocation3 + $0x1e4] ss:$16 sps:$4 sm:$0xff]  }
  0x27   :  { %v907_v62 = vld [vmem:[#allocation3 + $0x1ec] ss:$16 sps:$4 sm:$0xff]   ;;  %v909_v63 = vld [vmem:[#allocation3 + $0x1e0] ss:$16 sps:$4 sm:$0xff]   ;;  %v910_v0 = vld [vmem:[#allocation3 + $0x1e8] ss:$16 sps:$4 sm:$0xff]  }
  0x28   :  { %483 = vmatpush1.bf16.msra.mxu0 %v849_v22  ;;  %536 = vmatpush1.bf16.msra.mxu1 %v850_v23  ;;  %v911_v1 = vld [vmem:[%s1015_s0] ss:$8 sps:$4 sm:$0xff]   ;;  %v914_v2 = vld [vmem:[%s1015_s0 + $0x14] ss:$8 sps:$4 sm:$0xff]   ;;  %v916_v3 = vld [vmem:[%s1015_s0 + $0x10] ss:$8 sps:$4 sm:$0xff]  }
  0x29   :  { %484 = vmatprep.subr.bf16.mxu0 %v851_v24  ;;  %537 = vmatprep.subr.bf16.mxu1 %v853_v25  ;;  %v632_v5 = vshrl.u32 %v631_v4, 7  ;;  %v629_v8 = vld [vmem:[%s1017_s2] sm:$0xf] }
  0x2b   :  { %v633_v6 = vsub.s32 0, %v632_v5  ;;  %v641_v7 = vsub.s32 2, %v632_v5  ;;  %v637_v9 = vsub.s32 1, %v632_v5  ;;  %v645_v10 = vsub.s32 3, %v632_v5 }
  0x2c   :  { %485 = vmatpush1.bf16.msra.mxu0 %v855_v26  ;;  %538 = vmatpush1.bf16.msra.mxu1 %v856_v27 }
  0x2d   :  { %486 = vmatprep.subr.bf16.mxu0 %v857_v28  ;;  %539 = vmatprep.subr.bf16.mxu1 %v859_v29  ;;  %v634_v11 = vrot.slane %v629_v8, %v633_v6  ;;  %v642_v12 = vrot.slane %v629_v8, %v641_v7  ;;  %v638_v13 = vrot.slane %v629_v8, %v637_v9 }
  0x2e   :  { %v646_v14 = vrot.slane %v629_v8, %v645_v10 }
  0x30   :  { %487 = vmatpush1.bf16.msra.mxu0 %v861_v30  ;;  %540 = vmatpush1.bf16.msra.mxu1 %v862_v31 }
  0x31   :  { %488 = vmatprep.subr.bf16.mxu0 %v863_v32  ;;  %541 = vmatprep.subr.bf16.mxu1 %v865_v33 }
  0x34   :  { %489 = vmatpush1.bf16.msra.mxu0 %v867_v34  ;;  %542 = vmatpush1.bf16.msra.mxu1 %v868_v35 }
  0x35   :  { %490 = vmatprep.subr.bf16.mxu0 %v869_v36  ;;  %543 = vmatprep.subr.bf16.mxu1 %v871_v37 }
  0x38   :  { %491 = vmatpush1.bf16.msra.mxu0 %v873_v38  ;;  %544 = vmatpush1.bf16.msra.mxu1 %v874_v39 }
  0x39   :  { %492 = vmatprep.subr.bf16.mxu0 %v875_v40  ;;  %545 = vmatprep.subr.bf16.mxu1 %v877_v41 }
  0x3c   :  { %493 = vmatpush1.bf16.msra.mxu0 %v879_v42  ;;  %546 = vmatpush1.bf16.msra.mxu1 %v880_v43 }
  0x3d   :  { %494 = vmatprep.subr.bf16.mxu0 %v881_v44  ;;  %547 = vmatprep.subr.bf16.mxu1 %v883_v45 }
  0x40   :  { %495 = vmatpush1.bf16.msra.mxu0 %v885_v46  ;;  %548 = vmatpush1.bf16.msra.mxu1 %v886_v48 }
  0x41   :  { %496 = vmatprep.subr.bf16.mxu0 %v887_v49  ;;  %549 = vmatprep.subr.bf16.mxu1 %v889_v50 }
  0x44   :  { %497 = vmatpush1.bf16.msra.mxu0 %v891_v51  ;;  %550 = vmatpush1.bf16.msra.mxu1 %v892_v52 }
  0x45   :  { %498 = vmatprep.subr.bf16.mxu0 %v893_v53  ;;  %551 = vmatprep.subr.bf16.mxu1 %v895_v54 }
  0x48   :  { %499 = vmatpush1.bf16.msra.mxu0 %v897_v55  ;;  %552 = vmatpush1.bf16.msra.mxu1 %v898_v56 }
  0x49   :  { %500 = vmatprep.subr.bf16.mxu0 %v899_v57  ;;  %553 = vmatprep.subr.bf16.mxu1 %v901_v58 }
  0x4c   :  { %501 = vmatpush1.bf16.msra.mxu0 %v903_v59  ;;  %554 = vmatpush1.bf16.msra.mxu1 %v904_v60 }
  0x4d   :  { %502 = vmatprep.subr.bf16.mxu0 %v905_v61  ;;  %555 = vmatprep.subr.bf16.mxu1 %v907_v62 }
  0x50   :  { %503 = vmatpush1.bf16.msra.mxu0 %v909_v63  ;;  %556 = vmatpush1.bf16.msra.mxu1 %v910_v0 }
  0x53   :  { %505 = vmatmul.mubr.bf16.vlgmr.msra.gmra.mrb[0].mxu0 %v911_v1  ;;  %558 = vmatmul.mubr.bf16.vlgmr.msra.gmra.mrb[0].mxu1 %v911_v1 }
  0x54   :  { %514 = vmatprep.mubr.bf16.mxu0 %v914_v2  ;;  %567 = vmatprep.mubr.bf16.mxu1 %v914_v2 }
  0x5b   :  { %515 = vmatmul.mubr.bf16.gmra.mrb[4].mxu0 %v916_v3  ;;  %568 = vmatmul.mubr.bf16.gmra.mrb[4].mxu1 %v916_v3 }
 0x126   :  { %v506_v15 = vpop.f32.mrb[0].mxu0  ;;  %v559_v16 = vpop.f32.mrb[0].mxu1 }
 0x127   :  { %v651_v17 = vadd.f32 %v634_v11, %v506_v15  ;;  %v653_v18 = vadd.f32 %v642_v12, %v559_v16  ;;  %v508_v19 = vpop.f32.mrb[1].mxu0  ;;  %v561_v20 = vpop.f32.mrb[1].mxu1 }
 0x128   :  { %v652_v21 = vadd.f32 %v638_v13, %v508_v19  ;;  %v654_v22 = vadd.f32 %v646_v14, %v561_v20  ;;  %v510_v23 = vpop.f32.mrb[2].mxu0  ;;  %v563_v24 = vpop.f32.mrb[2].mxu1 }
 0x129   :  { %v655_v25 = vadd.f32 %v634_v11, %v510_v23  ;;  %v657_v26 = vadd.f32 %v642_v12, %v563_v24  ;;  %v512_v27 = vpop.f32.mrb[3].mxu0  ;;  %v565_v28 = vpop.f32.mrb[3].mxu1 }
 0x12a   :  { %v804_v29 = vpack.c.bf16 %v652_v21, %v651_v17  ;;  %v805_v30 = vpack.c.bf16 %v654_v22, %v653_v18  ;;  %v656_v31 = vadd.f32 %v638_v13, %v512_v27  ;;  %v658_v32 = vadd.f32 %v646_v14, %v565_v28 }
 0x12c   :  { %715 = vst [vmem:[%s1018_s3] sm:$0xff] %v804_v29  ;;  %716 = vst [vmem:[%s1018_s3 + $0x8] sm:$0xff] %v805_v30  ;;  %v806_v33 = vpack.c.bf16 %v656_v31, %v655_v25  ;;  %v807_v34 = vpack.c.bf16 %v658_v32, %v657_v26 }
 0x12e   :  { %717 = vst [vmem:[%s1018_s3 + $0x10] sm:$0xff] %v806_v33  ;;  %718 = vst [vmem:[%s1018_s3 + $0x18] sm:$0xff] %v807_v34  ;;  %v516_v35 = vpop.f32.mrb[4].mxu0  ;;  %v569_v36 = vpop.f32.mrb[4].mxu1 }
 0x12f   :  { %v659_v37 = vadd.f32 %v634_v11, %v516_v35  ;;  %v661_v38 = vadd.f32 %v642_v12, %v569_v36  ;;  %v518_v39 = vpop.f32.mrb[5].mxu0  ;;  %v571_v40 = vpop.f32.mrb[5].mxu1 }
 0x130   :  { %v660_v41 = vadd.f32 %v638_v13, %v518_v39  ;;  %v662_v42 = vadd.f32 %v646_v14, %v571_v40  ;;  %v520_v43 = vpop.f32.mrb[6].mxu0  ;;  %v573_v44 = vpop.f32.mrb[6].mxu1 }
 0x131   :  { %v663_v45 = vadd.f32 %v634_v11, %v520_v43  ;;  %v665_v46 = vadd.f32 %v642_v12, %v573_v44  ;;  %v522_v47 = vpop.f32.mrb[7].mxu0  ;;  %v575_v48 = vpop.f32.mrb[7].mxu1 }
 0x132   :  { %v808_v49 = vpack.c.bf16 %v660_v41, %v659_v37  ;;  %v809_v50 = vpack.c.bf16 %v662_v42, %v661_v38  ;;  %v664_v51 = vadd.f32 %v638_v13, %v522_v47  ;;  %v666_v52 = vadd.f32 %v646_v14, %v575_v48 }
 0x134   :  { %719 = vst [vmem:[%s1018_s3 + $0x20] sm:$0xff] %v808_v49  ;;  %720 = vst [vmem:[%s1018_s3 + $0x28] sm:$0xff] %v809_v50  ;;  %v810_v53 = vpack.c.bf16 %v664_v51, %v663_v45  ;;  %v811_v54 = vpack.c.bf16 %v666_v52, %v665_v46 }
 0x136   :  { %721 = vst [vmem:[%s1018_s3 + $0x30] sm:$0xff] %v810_v53  ;;  %722 = vst [vmem:[%s1018_s3 + $0x38] sm:$0xff] %v811_v54 }
 0x137   :  { %727 = vsyncpa [#allocation4], 1 }

// kernel: multi_query_attention_forward.5
= control target key start
LH: loop header
LB: loop body
LE: loop exit
PB: predicated region body
PF: predicated region fallthrough
CT: control target
= control target key end

     0   :  { %s670_s0 = inlined_call_operand.vmem [shape: bf16[32,256], index: 0, kind: input, shape index: {}]   ;;  %s671_s1 = inlined_call_operand.vmem [shape: bf16[256,256], index: 1, kind: input, shape index: {}]   ;;  %s672_s2 = inlined_call_operand.vmem [shape: f32[1,256], index: 2, kind: input, shape index: {}]   ;;  %s673_s3 = inlined_call_operand.hbm [shape: f32[32,256], index: 3, kind: output, shape index: {}]  }
   0x1   :  { %v446_v0 = vld [vmem:[%s671_s1 + $0x4] ss:$8 sps:$4 sm:$0xff]   ;;  %v448_v1 = vld [vmem:[%s671_s1] ss:$8 sps:$4 sm:$0xff]   ;;  %v449_v2 = vld [vmem:[%s671_s1 + $0x14] ss:$8 sps:$4 sm:$0xff]  }
   0x2   :  { %251 = vmatprep.subr.bf16.mxu0 %v446_v0  ;;  %411 = vmatprep.subr.bf16.mxu1 %v446_v0  ;;  %v451_v3 = vld [vmem:[%s671_s1 + $0x10] ss:$8 sps:$4 sm:$0xff]   ;;  %v452_v4 = vld [vmem:[%s671_s1 + $0x24] ss:$8 sps:$4 sm:$0xff]   ;;  %v454_v5 = vld [vmem:[%s671_s1 + $0x20] ss:$8 sps:$4 sm:$0xff]  }
   0x3   :  { %252 = vmatpush1.bf16.msra.mxu0 %v448_v1  ;;  %427 = vmatpush1.bf16.msra.mxu1 %v448_v1  ;;  %v455_v6 = vld [vmem:[%s671_s1 + $0x34] ss:$8 sps:$4 sm:$0xff]   ;;  %v457_v7 = vld [vmem:[%s671_s1 + $0x30] ss:$8 sps:$4 sm:$0xff]   ;;  %v458_v8 = vld [vmem:[%s671_s1 + $0x44] ss:$8 sps:$4 sm:$0xff]  }
   0x4   :  { %253 = vmatprep.subr.bf16.mxu0 %v449_v2  ;;  %412 = vmatprep.subr.bf16.mxu1 %v449_v2  ;;  %v460_v9 = vld [vmem:[%s671_s1 + $0x40] ss:$8 sps:$4 sm:$0xff]   ;;  %v461_v10 = vld [vmem:[%s671_s1 + $0x54] ss:$8 sps:$4 sm:$0xff]   ;;  %v463_v11 = vld [vmem:[%s671_s1 + $0x50] ss:$8 sps:$4 sm:$0xff]  }
   0x5   :  { %v464_v12 = vld [vmem:[%s671_s1 + $0x64] ss:$8 sps:$4 sm:$0xff]   ;;  %v466_v14 = vld [vmem:[%s671_s1 + $0x60] ss:$8 sps:$4 sm:$0xff]   ;;  %v499_v15 = vld [vmem:[%s670_s0 + $0x14] ss:$8 sps:$4 sm:$0xff]  }
   0x6   :  { %v496_v13 = vld [vmem:[%s670_s0 + $0x4] ss:$8 sps:$4 sm:$0xff]   ;;  %v467_v16 = vld [vmem:[%s671_s1 + $0x74] ss:$8 sps:$4 sm:$0xff]  }
   0x7   :  { %254 = vmatpush1.bf16.msra.mxu0 %v451_v3  ;;  %428 = vmatpush1.bf16.msra.mxu1 %v451_v3 }
   0x8   :  { %255 = vmatprep.subr.bf16.mxu0 %v452_v4  ;;  %413 = vmatprep.subr.bf16.mxu1 %v452_v4 }
   0xb   :  { %256 = vmatpush1.bf16.msra.mxu0 %v454_v5  ;;  %429 = vmatpush1.bf16.msra.mxu1 %v454_v5 }
   0xc   :  { %257 = vmatprep.subr.bf16.mxu0 %v455_v6  ;;  %414 = vmatprep.subr.bf16.mxu1 %v455_v6 }
   0xf   :  { %258 = vmatpush1.bf16.msra.mxu0 %v457_v7  ;;  %430 = vmatpush1.bf16.msra.mxu1 %v457_v7 }
  0x10   :  { %259 = vmatprep.subr.bf16.mxu0 %v458_v8  ;;  %415 = vmatprep.subr.bf16.mxu1 %v458_v8 }
  0x13   :  { %260 = vmatpush1.bf16.msra.mxu0 %v460_v9  ;;  %431 = vmatpush1.bf16.msra.mxu1 %v460_v9 }
  0x14   :  { %261 = vmatprep.subr.bf16.mxu0 %v461_v10  ;;  %416 = vmatprep.subr.bf16.mxu1 %v461_v10 }
  0x17   :  { %262 = vmatpush1.bf16.msra.mxu0 %v463_v11  ;;  %432 = vmatpush1.bf16.msra.mxu1 %v463_v11 }
  0x18   :  { %263 = vmatprep.subr.bf16.mxu0 %v464_v12  ;;  %417 = vmatprep.subr.bf16.mxu1 %v464_v12 }
  0x19   :  { %8 = vsyncpa [#allocation4], 0  ;;  %283 = vmatprep.mubr.bf16.mxu0 %v496_v13  ;;  %293 = vmatprep.mubr.bf16.mxu1 %v499_v15  ;;  %v469_v17 = vld [vmem:[%s671_s1 + $0x70] ss:$8 sps:$4 sm:$0xff]   ;;  %v470_v18 = vld [vmem:[%s671_s1 + $0x84] ss:$8 sps:$4 sm:$0xff]   ;;  %v333_v36 = vlaneseq }
  0x1a   :  { %v472_v19 = vld [vmem:[%s671_s1 + $0x80] ss:$8 sps:$4 sm:$0xff]   ;;  %v473_v20 = vld [vmem:[%s671_s1 + $0x94] ss:$8 sps:$4 sm:$0xff]   ;;  %v475_v21 = vld [vmem:[%s671_s1 + $0x90] ss:$8 sps:$4 sm:$0xff]  }
  0x1b   :  { %264 = vmatpush1.bf16.msra.mxu0 %v466_v14  ;;  %433 = vmatpush1.bf16.msra.mxu1 %v466_v14  ;;  %v476_v22 = vld [vmem:[%s671_s1 + $0xa4] ss:$8 sps:$4 sm:$0xff]   ;;  %v478_v23 = vld [vmem:[%s671_s1 + $0xa0] ss:$8 sps:$4 sm:$0xff]   ;;  %v479_v24 = vld [vmem:[%s671_s1 + $0xb4] ss:$8 sps:$4 sm:$0xff]  }
  0x1c   :  { %265 = vmatprep.subr.bf16.mxu0 %v467_v16  ;;  %418 = vmatprep.subr.bf16.mxu1 %v467_v16  ;;  %v481_v25 = vld [vmem:[%s671_s1 + $0xb0] ss:$8 sps:$4 sm:$0xff]   ;;  %v482_v26 = vld [vmem:[%s671_s1 + $0xc4] ss:$8 sps:$4 sm:$0xff]   ;;  %v484_v27 = vld [vmem:[%s671_s1 + $0xc0] ss:$8 sps:$4 sm:$0xff]  }
  0x1d   :  { %v485_v28 = vld [vmem:[%s671_s1 + $0xd4] ss:$8 sps:$4 sm:$0xff]   ;;  %v487_v29 = vld [vmem:[%s671_s1 + $0xd0] ss:$8 sps:$4 sm:$0xff]   ;;  %v488_v30 = vld [vmem:[%s671_s1 + $0xe4] ss:$8 sps:$4 sm:$0xff]  }
  0x1e   :  { %v490_v31 = vld [vmem:[%s671_s1 + $0xe0] ss:$8 sps:$4 sm:$0xff]   ;;  %v491_v32 = vld [vmem:[%s671_s1 + $0xf4] ss:$8 sps:$4 sm:$0xff]   ;;  %v493_v33 = vld [vmem:[%s671_s1 + $0xf0] ss:$8 sps:$4 sm:$0xff]  }
  0x1f   :  { %266 = vmatpush1.bf16.msra.mxu0 %v469_v17  ;;  %434 = vmatpush1.bf16.msra.mxu1 %v469_v17  ;;  %v494_v34 = vld [vmem:[%s670_s0] ss:$8 sps:$4 sm:$0xff]   ;;  %v497_v35 = vld [vmem:[%s670_s0 + $0x10] ss:$8 sps:$4 sm:$0xff]   ;;  %v334_v37 = vshrl.u32 %v333_v36, 7  ;;  %s524_s1 = smov [#allocation3]  }
  0x20   :  { %267 = vmatprep.subr.bf16.mxu0 %v470_v18  ;;  %419 = vmatprep.subr.bf16.mxu1 %v470_v18  ;;  %v331_v39 = vld [vmem:[%s672_s2] sm:$0x3]  ;;  %s364_s5 = sshll.u32 %s524_s1, 4  ;;  %s365_s5 = int_to_ptr.vmem [resolvable:$true] %s364_s5 }
  0x21   :  { %v335_v38 = vsub.s32 0, %v334_v37  ;;  %v339_v40 = vsub.s32 1, %v334_v37  ;;  %s500_s0 = scalar_lea.vmem %s365_s5, 1024  ;;  %p505_p1 = scmp.lt.s32.totalorder %s365_s5, %s365_s5 }
  0x22   :  { %p501_p0 = scmp.ne.s32.totalorder %s365_s5, %s500_s0  ;;  %p506_p2 = scmp.lt.s32.totalorder %s500_s0, %s500_s0 }
  0x23   :  { %268 = vmatpush1.bf16.msra.mxu0 %v472_v19  ;;  %435 = vmatpush1.bf16.msra.mxu1 %v472_v19  ;;  %v336_v41 = vrot.slane %v331_v39, %v335_v38  ;;  %v340_v42 = vrot.slane %v331_v39, %v339_v40 }
  0x24   :  { %269 = vmatprep.subr.bf16.mxu0 %v473_v20  ;;  %420 = vmatprep.subr.bf16.mxu1 %v473_v20  ;;  %p507_p3 = por %p506_p2, %p505_p1 }
  0x26   :  { %p508_p4 = pnand %p507_p3, %p501_p0 }
  0x27   :  { %270 = vmatpush1.bf16.msra.mxu0 %v475_v21  ;;  %436 = vmatpush1.bf16.msra.mxu1 %v475_v21 }
  0x28   :  { %271 = vmatprep.subr.bf16.mxu0 %v476_v22  ;;  %421 = vmatprep.subr.bf16.mxu1 %v476_v22 }
  0x2b   :  { %272 = vmatpush1.bf16.msra.mxu0 %v478_v23  ;;  %437 = vmatpush1.bf16.msra.mxu1 %v478_v23 }
  0x2c   :  { %273 = vmatprep.subr.bf16.mxu0 %v479_v24  ;;  %422 = vmatprep.subr.bf16.mxu1 %v479_v24 }
  0x2f   :  { %274 = vmatpush1.bf16.msra.mxu0 %v481_v25  ;;  %438 = vmatpush1.bf16.msra.mxu1 %v481_v25 }
  0x30   :  { %275 = vmatprep.subr.bf16.mxu0 %v482_v26  ;;  %423 = vmatprep.subr.bf16.mxu1 %v482_v26 }
  0x33   :  { %276 = vmatpush1.bf16.msra.mxu0 %v484_v27  ;;  %439 = vmatpush1.bf16.msra.mxu1 %v484_v27 }
  0x34   :  { %277 = vmatprep.subr.bf16.mxu0 %v485_v28  ;;  %424 = vmatprep.subr.bf16.mxu1 %v485_v28 }
  0x37   :  { %278 = vmatpush1.bf16.msra.mxu0 %v487_v29  ;;  %440 = vmatpush1.bf16.msra.mxu1 %v487_v29 }
  0x38   :  { %279 = vmatprep.subr.bf16.mxu0 %v488_v30  ;;  %425 = vmatprep.subr.bf16.mxu1 %v488_v30 }
  0x3b   :  { %280 = vmatpush1.bf16.msra.mxu0 %v490_v31  ;;  %441 = vmatpush1.bf16.msra.mxu1 %v490_v31 }
  0x3c   :  { %281 = vmatprep.subr.bf16.mxu0 %v491_v32  ;;  %426 = vmatprep.subr.bf16.mxu1 %v491_v32 }
  0x3f   :  { %282 = vmatpush1.bf16.msra.mxu0 %v493_v33  ;;  %442 = vmatpush1.bf16.msra.mxu1 %v493_v33 }
  0x42   :  { %284 = vmatmul.mubr.bf16.vlgmr.msra.gmra.mrb[0].mxu0 %v494_v34  ;;  %294 = vmatmul.mubr.bf16.vlgmr.msra.gmra.mrb[0].mxu1 %v497_v35 }
 0x115   :  { %v285_v43 = vpop.f32.mrb[0].mxu0  ;;  %v295_v44 = vpop.f32.mrb[0].mxu1 }
 0x116   :  { %v343_v45 = vadd.f32 %v336_v41, %v285_v43  ;;  %v347_v46 = vadd.f32 %v336_v41, %v295_v44  ;;  %v287_v47 = vpop.f32.mrb[1].mxu0  ;;  %v297_v48 = vpop.f32.mrb[1].mxu1 }
 0x117   :  { %v344_v49 = vadd.f32 %v340_v42, %v287_v47  ;;  %v348_v50 = vadd.f32 %v340_v42, %v297_v48  ;;  %v289_v51 = vpop.f32.mrb[2].mxu0  ;;  %v299_v52 = vpop.f32.mrb[2].mxu1 }
 0x118   :  { %351 = vst [vmem:[#allocation3] sm:$0xff] %v343_v45  ;;  %355 = vst [vmem:[#allocation3 + $0x20] sm:$0xff] %v347_v46  ;;  %v345_v53 = vadd.f32 %v336_v41, %v289_v51  ;;  %v349_v54 = vadd.f32 %v336_v41, %v299_v52  ;;  %v291_v55 = vpop.f32.mrb[3].mxu0  ;;  %v301_v56 = vpop.f32.mrb[3].mxu1 }
 0x119   :  { %352 = vst [vmem:[#allocation3 + $0x8] sm:$0xff] %v344_v49  ;;  %356 = vst [vmem:[#allocation3 + $0x28] sm:$0xff] %v348_v50  ;;  %v346_v57 = vadd.f32 %v340_v42, %v291_v55  ;;  %v350_v58 = vadd.f32 %v340_v42, %v301_v56 }
 0x11a   :  { %353 = vst [vmem:[#allocation3 + $0x10] sm:$0xff] %v345_v53  ;;  %357 = vst [vmem:[#allocation3 + $0x30] sm:$0xff] %v349_v54 }
 0x11b   :  { %354 = vst [vmem:[#allocation3 + $0x18] sm:$0xff] %v346_v57  ;;  %358 = vst [vmem:[#allocation3 + $0x38] sm:$0xff] %v350_v58 }
 0x11c   :  { %511 = shalt.err (!%p508_p4)
}
 0x11d   :  { %s512_s7 = scalar_lea.hbm %s673_s3, 1024 }
 0x11e   :  { %p513_p5 = scmp.ne.s32.totalorder %s673_s3, %s512_s7  ;;  %p516_p6 = scmp.lt.u32.totalorder %s512_s7, %s673_s3 }
 0x120   :  { %p518_p7 = pnand %p516_p6, %p513_p5 }
 0x122   :  { %521 = shalt.err (!%p518_p7)
}
 0x123   :  { %s525_s12 = smov 256   ;;  %s526_s13 = smov 16  }
 0x124   :  { %370 = dma.vmem_to_hbm [thread:$0]  %s365_s5, 1024, %s673_s3, [#allocation4], %s525_s12, %s525_s12, %s526_s13  }
 0x125   :  { %522 = dma.done.wait [#allocation4], 1024  }
 0x126   :  { %523 = vsyncadd [#allocation4], 4294966272 }
 0x127   :  { %374 = vsyncpa [#allocation4], 1 }

// kernel: multi_query_attention_forward.4
= control target key start
LH: loop header
LB: loop body
LE: loop exit
PB: predicated region body
PF: predicated region fallthrough
CT: control target
= control target key end

     0   :  { %s1138_s24 = smov 0   ;;  %s1140_s25 = smov 0   ;;  %s1255_s0 = inlined_call_operand.vmem [shape: bf16[2,32,128], index: 0, kind: input, shape index: {}]   ;;  %s1256_s1 = inlined_call_operand.vmem [shape: bf16[2,16,128], index: 1, kind: input, shape index: {}]   ;;  %s1257_s2 = inlined_call_operand.vmem [shape: bf16[2,16,128], index: 2, kind: input, shape index: {}]   ;;  %s1258_s3 = inlined_call_operand.vmem [shape: bf16[32,128], index: 3, kind: input, shape index: {}]   ;;  %s1259_s4 = inlined_call_operand.vmem [shape: bf16[32,128], index: 4, kind: input, shape index: {}]   ;;  %s1260_s5 = inlined_call_operand.vmem [shape: bf16[16,128], index: 5, kind: input, shape index: {}]   ;;  %s1261_s6 = inlined_call_operand.vmem [shape: bf16[16,128], index: 6, kind: input, shape index: {}]   ;;  %s1262_s7 = inlined_call_operand.vmem [shape: bf16[2,32,128], index: 7, kind: output, shape index: {}]  }
   0x1   :  { %1265 = sst [smem:[#allocation11_spill]] %s1255_s0  ;;  %s1142_s26 = smov 0  }
   0x2   :  { %s1144_s27 = smov 0   ;;  %s1146_s28 = smov 0  }
   0x3   :  { %s1148_s29 = smov 0   ;;  %s1150_s30 = smov 0  }
   0x4 LB: > { %1266 = sst [smem:[#allocation6_spill]] %s1080_s28  ;;  %s29_s8 = sadd.s32 1, %s1076_s27  ;;  %s1088_s30 = sphi %s1150_s30, %s17_s30   ;;  %s1084_s29 = sphi %s1148_s29, %s1276_s29   ;;  %s1080_s28 = sphi %s1146_s28, %s1275_s28   ;;  %s1076_s27 = sphi %s1144_s27, %s1278_s27   ;;  %s1072_s26 = sphi %s1142_s26, %s1273_s26   ;;  %s1068_s25 = sphi %s1140_s25, %s1272_s25   ;;  %s1064_s24 = sphi %s1138_s24, %s1277_s24  }
   0x5   : > { %1267 = sst [smem:[#allocation7_spill]] %s1084_s29  ;;  %p30_p0 = scmp.ge.s32.totalorder %s29_s8, 2 }
   0x6   : > { %s32_s9 = sadd.s32 1, %s1080_s28  ;;  %p891_p1 = scmp.ge.s32.totalorder %s1088_s30, 1 }
   0x7   : > { %p335_p2 = scmp.lt.s32.totalorder %s1088_s30, 9  ;;  %s1280_s8 = smov (%p30_p0, %s29_s8), 0 }
   0x8   : > { %1268 = sst [smem:[#allocation8_spill]] %s1280_s8  ;;  %s1282_s9 = smov (!%p30_p0, %s32_s9), %s1080_s28 }
   0x9   : > { %p336_p3 = pnand %p891_p1, %p335_p2  ;;  %p34_p4 = scmp.ge.s32.totalorder %s1282_s9, 2 }
   0xa   : > { %s36_s10 = sadd.s32 1, %s1084_s29  ;;  %s892_s11 = sshll.u32 (!%p336_p3), %s1068_s25, 1 }
   0xb   : > { %s1284_s9 = smov (%p34_p4, %s1282_s9), 0  ;;  %s1286_s10 = smov (!%p34_p4, %s36_s10), %s1084_s29 }
   0xc   : > { %1269 = sst [smem:[#allocation9_spill]] %s1284_s9  ;;  %p38_p5 = scmp.ge.s32.totalorder %s1286_s10, 2 }
   0xd   : > { %339 = sbr.rel (%p336_p3) target bundleno = 1089 (0x441), region = 48  ;;  %p410_p6 = scmp.lt.s32.totalorder (!%p336_p3), %s1072_s26, 1 }
   0xe   : > { %s1288_s10 = smov (%p38_p5, %s1286_s10), 0  ;;  %p412_p7 = scmp.lt.s32.totalorder (!%p336_p3), %s892_s11, 3 }
   0xf   : > { %1270 = sst [smem:[#allocation10_spill]] %s1288_s10  ;;  %p421_p8 = scmp.lt.s32.totalorder (!%p336_p3), %s1064_s24, 1 }
  0x10   : > { %s1271_s0 = sld [smem:[#allocation11_spill]] (!%p336_p3)  ;;  %p908_p9 = scmp.ne.s32.totalorder (!%p336_p3), %s1064_s24, 0 }
  0x14   : > { %s1290_s26 = smov (!%p410_p6, %s1072_s26), 1  ;;  %s1292_s11 = smov (!%p412_p7, %s892_s11), 3 }
  0x15   : > { %s893_s12 = sshll.u32 %s1290_s26, 2  ;;  %s895_s13 = sshll.u32 %s1290_s26, 1  ;;  %vm496_vm0 = vcmask (!%p908_p9), 7168   ;;  %v1090_v4 = vmov (!%p908_p9), -inf   ;;  %v1091_v5 = vmov (!%p908_p9), 0.0  }
  0x16   : > { %s415_s14 = sadd.s32 %s893_s12, %s1292_s11  ;;  %s900_s15 = sshll.u32 %s1292_s11, 2  ;;  %497 = vst.msk [vmem:[#allocation3] sm:$0xff] (!%p908_p9), %vm496_vm0, %v1090_v4  ;;  %498 = vst.msk [vmem:[#allocation3 + $0x8] sm:$0xff] (!%p908_p9), %vm496_vm0, %v1090_v4 }
  0x17   : > { %s894_s16 = sshll.u32 %s415_s14, 2  ;;  %s439_s19 = scalar_lea.vmem %s1258_s3, %s900_s15  ;;  %499 = vst.msk [vmem:[#allocation4] sm:$0xff] (!%p908_p9), %vm496_vm0, %v1091_v5  ;;  %500 = vst.msk [vmem:[#allocation4 + $0x8] sm:$0xff] (!%p908_p9), %vm496_vm0, %v1091_v5 }
  0x18   : > { %s417_s22 = scalar_lea.vmem %s1271_s0, %s894_s16  ;;  %s445_s10 = scalar_lea.vmem %s1259_s4, %s900_s15  ;;  %501 = vst [vmem:[#allocation5] sm:$0xff] (!%p908_p9), %v1091_v5  ;;  %502 = vst [vmem:[#allocation5 + $0x8] sm:$0xff] (!%p908_p9), %v1091_v5  ;;  %v922_v6 = vld [vmem:[%s439_s19] sm:$0xff] (!%p908_p9)  }
  0x19   : > { %s422_s9 = scalar_select %p421_p8, %s1064_s24, 1 }
  0x1a   : > { %s1196_s26 = scalar_lea.vmem %s1262_s7, %s894_s16  ;;  %469 = sbr.rel (%p908_p9) target bundleno = 157 (0x9d), region = 52  ;;  %v918_v0 = vld [vmem:[%s417_s22] sm:$0xff] (!%p908_p9)   ;;  %v923_v8 = vunpack.c.l.bf16 (!%p908_p9), %v922_v6  ;;  %v924_v9 = vunpack.c.h.bf16 (!%p908_p9), %v922_v6 }
  0x1b   : > { %s424_s11 = sadd.s32 %s895_s13, %s422_s9  ;;  %s903_s12 = sshll.u32 %s422_s9, 2  ;;  %v919_v1 = vunpack.c.l.bf16 (!%p908_p9), %v918_v0  ;;  %v920_v2 = vunpack.c.h.bf16 (!%p908_p9), %v918_v0  ;;  %v926_v7 = vld [vmem:[%s445_s10] sm:$0xff] (!%p908_p9)  }
  0x1c   : > { %s896_s14 = sshll.u32 %s424_s11, 2  ;;  %s1201_s18 = scalar_lea.vmem %s1260_s5, %s903_s12  ;;  %v927_v10 = vunpack.c.l.bf16 (!%p908_p9), %v926_v7  ;;  %v928_v11 = vunpack.c.h.bf16 (!%p908_p9), %v926_v7 }
  0x1d   : > { %s1206_s0 = scalar_lea.vmem %s1256_s1, %s896_s14  ;;  %s1211_s25 = scalar_lea.vmem %s1257_s2, %s896_s14  ;;  %v1014_v3 = vpack.i.bf16 (!%p908_p9), %v920_v2, %v919_v1  ;;  %v483_v13 = vmul.f32 (!%p908_p9), %v924_v9, %v920_v2  ;;  %v482_v14 = vmul.f32 (!%p908_p9), %v923_v8, %v919_v1 }
  0x1e   : > { %s1216_s9 = scalar_lea.vmem %s1261_s6, %s903_s12  ;;  %s1092_s28 = smov (!%p908_p9), 64  }
  0x1f   : > { %1015 = vrot.lane.b32.xlu0 (!%p908_p9), %v1014_v3, %s1092_s28 }
  0x91   : > { %v1016_v12 = vpop.permute.xlu0 %1015 }
  0x92   : > { %v1018_v15 = vunpack.i.h.bf16 %v1016_v12  ;;  %v1017_v16 = vunpack.i.l.bf16 %v1016_v12 }
  0x94   : > { %v489_v17 = vmul.f32 %v1018_v15, %v928_v11  ;;  %v488_v18 = vmul.f32 %v1017_v16, %v927_v10 }
  0x96   : > { %v491_v19 = vadd.f32 %v489_v17, %v483_v13  ;;  %v490_v20 = vadd.f32 %v488_v18, %v482_v14 }
  0x98   : > { %v493_v21 = vmul.f32 0.088388346, %v491_v19  ;;  %v492_v22 = vmul.f32 0.088388346, %v490_v20 }
  0x9a   : > { %v494_v23 = vpack.c.bf16 %v493_v21, %v492_v22 }
  0x9c   : > { %495 = vst [vmem:[#allocation2] sm:$0xff] %v494_v23 }
  0x9d PF: > { %v503_v24 = vld [vmem:[%s1206_s0] sm:$0xf]  ;;  %v1093_v26 = vmov 0.0   ;;  %vm1094_vm1 = vmmov 0   ;;  %s1095_s10 = smov 64   ;;  %vm559_vm2 = vcmask 64512  }
  0x9e   : > { %v504_v25 = vunpack.c.l.bf16 %v503_v24  ;;  %938 = vmatprep.subr.bf16.mxu0 %v1093_v26  ;;  %944 = vmatprep.subr.bf16.mxu1 %v1093_v26  ;;  %v505_v27 = vld [vmem:[%s1201_s18] sm:$0xf]  ;;  %v1096_v43 = vmov 0   ;;  %v557_v44 = vld [vmem:[#allocation3] sm:$0xff]  ;;  %vm602_vm3 = vcmask 7168   ;;  %v558_v46 = vld [vmem:[#allocation3 + $0x8] sm:$0xff] }
  0x9f   : > { %940 = vmatprep.mubr.msk.bf16.mxu0 %vm1094_vm1, %v1093_v26  ;;  %946 = vmatprep.mubr.msk.bf16.mxu1 %vm1094_vm1, %v1093_v26  ;;  %v510_v28 = vld [vmem:[%s1216_s9] sm:$0xf]  ;;  %v506_v29 = vunpack.c.l.bf16 %v505_v27  ;;  %vm624_vm4 = vcmask 1043456   ;;  %v590_v5 = vld [vmem:[#allocation4] sm:$0xff]  ;;  %v605_v13 = vld [vmem:[#allocation5] sm:$0xff]  ;;  %p910_p10 = scmp.ne.s32.totalorder %s1064_s24, 1 }
  0xa0   : > { %508 = vrot.lane.b32.xlu0 %v504_v25, %s1095_s10  ;;  %v511_v30 = vunpack.c.l.bf16 %v510_v28  ;;  %1019 = vset.pattern.permute.xlu1 %v1096_v43  ;;  %v620_v52 = vld [vmem:[%s1211_s25] sm:$0xf]  ;;  %v606_v15 = vld [vmem:[#allocation5 + $0x8] sm:$0xff]  ;;  %v1097_v27 = vmov (!%p910_p10), 0  }
  0xa1   : > { %v507_v31 = vmul.f32 %v506_v29, %v504_v25  ;;  %1020 = vset.pattern.permute.xlu0 %v1096_v43  ;;  %v626_v53 = vsel %vm624_vm4, %v620_v52, 0  ;;  %v591_v8 = vld [vmem:[#allocation4 + $0x8] sm:$0xff] }
  0xa2   : > { %945 = vmatpush3.bf16.msra.mxu1 %v626_v53 }
  0xa3   : > { %v515_v36 = vld [vmem:[#allocation2] sm:$0xff] }
 0x112   : > { %v509_v32 = vpop.permute.xlu0 %508 }
 0x113   : > { %v512_v33 = vmul.f32 %v511_v30, %v509_v32 }
 0x115   : > { %v513_v34 = vadd.f32 %v512_v33, %v507_v31 }
 0x117   : > { %v514_v35 = vpack.c.bf16 %v513_v34, %v513_v34 }
 0x119   : > { %939 = vmatpush3.bf16.xpose.msra.mxu0 %v514_v35 }
 0x120   : > { %941 = vmatmul.mubr.bf16.vlgmr.msra.gmra.mrb[0].mxu0 %v515_v36 }
 0x1f3   : > { %v550_v37 = vpop.f32.mrb[0].mxu0 }
 0x1f4   : > { %v942_v38 = vpop.f32.mrb[1].mxu0  ;;  %v560_v39 = vsel %vm559_vm2, %v550_v37, -inf }
 0x1f5   : > { %561 = vmax.xlane.f32.xlu0 %v560_v39  ;;  %v553_v40 = vpop.f32.mrb[2].mxu0 }
 0x1f6   : > { %v943_v41 = vpop.f32.mrb[3].mxu0  ;;  %v563_v42 = vsel %vm559_vm2, %v553_v40, -inf }
 0x1f7   : > { %564 = vmax.xlane.f32.xlu1 %v563_v42 }
 0x282   : > { %v562_v45 = vpop.xlane.xlu0 %561 }
 0x283   : > { %v566_v47 = vmax.f32 %v557_v44, %v562_v45 }
 0x284   : > { %v565_v48 = vpop.xlane.xlu1 %564 }
 0x285   : > { %v568_v49 = vsub.f32 %v557_v44, %v566_v47  ;;  %673 = vst.msk [vmem:[#allocation3] sm:$0xff] %vm602_vm3, %v566_v47  ;;  %v567_v50 = vmax.f32 %v558_v46, %v565_v48  ;;  %576 = vperm.xlu1 %1019, %v566_v47  }
 0x287   : > { %v569_v51 = vsub.f32 %v558_v46, %v567_v50  ;;  %674 = vst.msk [vmem:[#allocation3 + $0x8] sm:$0xff] %vm602_vm3, %v567_v50  ;;  %v570_v2 = vmul.f32 1.442695, %v568_v49 }
 0x289   : > { %581 = vperm.xlu1 %1019, %v567_v50   ;;  %v572_v63 = vmul.f32 1.442695, %v569_v51 }
 0x304   : > { %v577_v54 = vpop.permute.xlu1 %576 }
 0x305   : > { %v584_v55 = vsub.f32 %v550_v37, %v577_v54 }
 0x307   : > { %v586_v56 = vmul.f32 1.442695, %v584_v55 }
 0x308   : > { %v582_v57 = vpop.permute.xlu1 %581 }
 0x309   : > { %1021 = vpow2.f32 %v586_v56  ;;  %v585_v58 = vsub.f32 %v553_v40, %v582_v57 }
 0x30b   : > { %v588_v59 = vmul.f32 1.442695, %v585_v58 }
 0x30d   : > { %1023 = vpow2.f32 %v588_v59 }
 0x30e   : > { %1025 = vpow2.f32 %v572_v63 }
 0x30f   : > { %1027 = vpow2.f32 %v570_v2 }
 0x313   : > { %v1022_v60 = vpop.eup %1021 }
 0x314   : > { %v594_v61 = vsel %vm559_vm2, %v1022_v60, 0.0 }
 0x315   : > { %595 = vadd.xlane.f32.xlu1 %v594_v61 }
 0x317   : > { %v1024_v62 = vpop.eup %1023 }
 0x318   : > { %v597_v0 = vsel %vm559_vm2, %v1024_v62, 0.0  ;;  %v619_v1 = vpack.c.bf16 %v1024_v62, %v1022_v60  ;;  %v1026_v3 = vpop.eup %1025 }
 0x319   : > { %598 = vadd.xlane.f32.xlu0 %v597_v0  ;;  %v1028_v4 = vpop.eup %1027  ;;  %v593_v10 = vmul.f32 %v1026_v3, %v591_v8 }
 0x31a   : > { %947 = vmatmul.mubr.msk.bf16.vlgmr.msra.gmra.mrb[0].mxu1 %vm559_vm2, %v619_v1  ;;  %v592_v6 = vmul.f32 %v1028_v4, %v590_v5 }
 0x326   : > { %614 = vperm.xlu1 %1019, %v1026_v3  }
 0x32f   : > { %609 = vperm.xlu0 %1020, %v1028_v4  }
 0x333   : > { %1029 = vset.pattern.permute.xlu0 (!%p910_p10), %v1097_v27 }
 0x3a2   : > { %v596_v7 = vpop.xlane.xlu1 %595 }
 0x3a3   : > { %v600_v9 = vadd.f32 %v596_v7, %v592_v6 }
 0x3a5   : > { %603 = vst.msk [vmem:[#allocation4] sm:$0xff] %vm602_vm3, %v600_v9 }
 0x3a6   : > { %v599_v11 = vpop.xlane.xlu0 %598  ;;  %v615_v16 = vpop.permute.xlu1 %614 }
 0x3a7   : > { %v601_v12 = vadd.f32 %v599_v11, %v593_v10  ;;  %v618_v19 = vmul.f32 %v615_v16, %v606_v15 }
 0x3a9   : > { %604 = vst.msk [vmem:[#allocation4 + $0x8] sm:$0xff] %vm602_vm3, %v601_v12 }
 0x3ac   : > { %v679_v25 = vld [vmem:[#allocation4] sm:$0xff] (!%p910_p10) }
 0x3ad   : > { %1030 = vrcp.f32 (!%p910_p10), %v679_v25 }
 0x3ae   : > { %v610_v14 = vpop.permute.xlu0 %609 }
 0x3af   : > { %v617_v17 = vmul.f32 %v610_v14, %v605_v13 }
 0x3b0   : > { %v680_v26 = vld [vmem:[#allocation4 + $0x8] sm:$0xff] (!%p910_p10) }
 0x3b1   : > { %1032 = vrcp.f32 (!%p910_p10), %v680_v26 }
 0x3b7   : > { %v1031_v28 = vpop.eup (!%p910_p10), %1030 }
 0x3b8   : > { %687 = vperm.xlu0 (!%p910_p10), %1029, %v1031_v28  }
 0x3bb   : > { %v1033_v29 = vpop.eup (!%p910_p10), %1032 }
 0x3bc   : > { %692 = vperm.xlu0 (!%p910_p10), %1029, %v1033_v29  }
 0x3ec   : > { %678 = sbr.rel (%p910_p10) target bundleno = 1089 (0x441), region = 56 }
 0x3ed   : > { %v662_v18 = vpop.f32.mrb[0].mxu1 }
 0x3ee   : > { %v669_v20 = vadd.f32 %v662_v18, %v617_v17  ;;  %v948_v21 = vpop.f32.mrb[1].mxu1 }
 0x3ef   : > { %v665_v22 = vpop.f32.mrb[2].mxu1 }
 0x3f0   : > { %671 = vst [vmem:[#allocation5] sm:$0xff] %v669_v20  ;;  %v670_v23 = vadd.f32 %v665_v22, %v618_v19  ;;  %v949_v24 = vpop.f32.mrb[3].mxu1 }
 0x3f2   : > { %672 = vst [vmem:[#allocation5 + $0x8] sm:$0xff] %v670_v23 }
 0x3f7   : > { %v683_v31 = vld [vmem:[#allocation5] sm:$0xff] }
 0x3f9   : > { %v684_v32 = vld [vmem:[#allocation5 + $0x8] sm:$0xff] }
 0x437   : > { %v688_v30 = vpop.permute.xlu0 %687 }
 0x438   : > { %v695_v34 = vmul.f32 %v688_v30, %v683_v31 }
 0x43b   : > { %v693_v33 = vpop.permute.xlu0 %692 }
 0x43c   : > { %v696_v35 = vmul.f32 %v693_v33, %v684_v32 }
 0x43e   : > { %v932_v36 = vpack.c.bf16 %v696_v35, %v695_v34 }
 0x440   : > { %933 = vst [vmem:[%s1196_s26] sm:$0xff] %v932_v36  }
 0x441 PF: > { %s17_s30 = sadd.s32 1, %s1088_s30   ;;  %s1272_s25 = sld [smem:[#allocation6_spill]] }
 0x442   : > { %p14_p11 = scmp.ge.s32.totalorder %s17_s30, 10   ;;  %s1273_s26 = sld [smem:[#allocation7_spill]] }
 0x443   : > { %s1274_s0 = sld [smem:[#allocation8_spill]]  ;;  %s1275_s28 = sld [smem:[#allocation9_spill]] }
 0x444   : > { %s1276_s29 = sld [smem:[#allocation10_spill]]  ;;  %s1277_s24 = smov %s1076_s27 }
 0x445   :  { %16 = sbr.rel (!%p14_p11) target bundleno = 4 (0x4), region = 104 }
 0x449   : > { %s1278_s27 = smov %s1274_s0 }

</bundles_post_ra>
